<compile_context>
chip_gen: v7x
topology: tpu7x:2x2x1
jax: 0.10.0
libtpu: 0.0.40
codegen_flags: <defaults>
</compile_context>

<pallas_src>
import jax
import jax.numpy as jnp
from jax.experimental import pallas as pl
from jax.experimental.pallas import tpu as pltpu


def _round_up(a, b):
    return ((a + b - 1) // b) * b


def _discriminator_kernel(x_ref, w1_ref, b1_ref, w3_ref, b3_ref, o_ref):
    # In-kernel cast of the x tile (VPU, hidden under the x DMA). For the
    # f32 compute path this is a no-op.
    x = x_ref[...].astype(w1_ref.dtype)
    # linear1 on the MXU with f32 accumulation.
    h = jnp.dot(x, w1_ref[...], preferred_element_type=jnp.float32)
    # Bias add + ReLU in f32 on the VPU.
    h = jnp.maximum(h + b1_ref[...], 0.0)
    # linear3 has out_features == 1: VPU multiply + lane reduce (XLU) instead
    # of a 1-lane-wide MXU matmul.
    z = jnp.sum(h * w3_ref[...], axis=-1)                 # (TM,)
    # Re-layout the TM logits into the lane-dense (8, TM//8) output block so
    # the sigmoid (EUP) and the store run on dense vregs.
    z = z.reshape(o_ref.shape) + b3_ref[...]              # (1,1) broadcasts
    o_ref[...] = jax.nn.sigmoid(z).astype(o_ref.dtype)


def discriminator_forward(x, w1_sn, b1, w3, b3, *, block_rows=2048,
                          compute_dtype=jnp.bfloat16):
    """y = sigmoid(relu(x @ w1_sn + b1) @ w3 + b3).

    x:     [N, input_dim]            (float32; cast to compute_dtype in-kernel)
    w1_sn: [input_dim, hidden]       (spectral-normalized linear1 weight, pre-transposed)
    b1:    [hidden]
    w3:    [1, hidden] or [hidden, 1]
    b3:    [1]
    """
    n, input_dim = x.shape
    hidden = w1_sn.shape[1]

    # Row tile: large (big x DMAs), multiple of 8 (sublane / lane-dense output
    # block is (8, tm//8)), but keep >= ~8 grid steps when rows are plentiful
    # so the "parallel" axis can be sharded across v7x's 2 TensorCores.
    tm = min(block_rows, _round_up(n, 8))
    if pl.cdiv(n, tm) < 8 and tm > 512:
        tm = max(512, _round_up(pl.cdiv(n, 8), 8))
    grid = pl.cdiv(n, tm)

    w1_c = w1_sn.astype(compute_dtype)   # tiny, grid-invariant; cast once
    b1_row = jnp.reshape(b1, (1, hidden)).astype(jnp.float32)
    w3_row = jnp.reshape(w3, (1, hidden)).astype(jnp.float32)
    b3_blk = jnp.reshape(b3, (1, 1)).astype(jnp.float32)

    cbytes = jnp.dtype(compute_dtype).itemsize
    vmem_bytes = (
        2 * tm * input_dim * 4              # x tile (f32), double-buffered
        + tm * input_dim * cbytes           # in-kernel low-precision copy
        + 2 * input_dim * hidden * cbytes   # resident w1 (default 2 buffers)
        + 4 * hidden * 4                    # b1 + w3 rows
        + 2 * tm * hidden * 4               # h / relu temporaries (f32)
        + 2 * tm * 4                        # output tile, double-buffered
    )
    vmem_limit = int(min(64 * 1024 * 1024, vmem_bytes + 8 * 1024 * 1024))

    cost = pl.CostEstimate(
        flops=2 * n * input_dim * hidden + 2 * n * hidden,
        transcendentals=n,
        bytes_accessed=(n * input_dim * 4 + input_dim * hidden * cbytes
                        + 2 * hidden * 4 + n * 4),
    )

    out = pl.pallas_call(
        _discriminator_kernel,
        out_shape=jax.ShapeDtypeStruct((grid * 8, tm // 8), jnp.float32),
        grid_spec=pltpu.PrefetchScalarGridSpec(
            num_scalar_prefetch=0,
            grid=(grid,),
            in_specs=[
                pl.BlockSpec((tm, input_dim), lambda i: (i, 0)),      # x tile (f32)
                pl.BlockSpec((input_dim, hidden), lambda i: (0, 0)),  # w1 (resident)
                pl.BlockSpec((1, hidden), lambda i: (0, 0)),          # b1
                pl.BlockSpec((1, hidden), lambda i: (0, 0)),          # w3 row
                pl.BlockSpec((1, 1), lambda i: (0, 0)),               # b3
            ],
            out_specs=pl.BlockSpec((8, tm // 8), lambda i: (i, 0)),
        ),
        compiler_params=pltpu.CompilerParams(
            dimension_semantics=("parallel",),
            vmem_limit_bytes=vmem_limit),
        cost_estimate=cost,
    )(x.astype(jnp.float32), w1_c, b1_row, w3_row, b3_blk)

    # (grid*8, tm//8) flattens row-major back to row order; drop ragged tail.
    return out.reshape(-1)[:n].reshape(n, 1)


def spectral_normalize(w, u, n_power_iterations=1, eps=1e-12):
    """PyTorch-style spectral norm (power iteration). Host-side glue math.

    w: [out_features, in_features], u: [out_features]. Returns w / sigma."""
    if n_power_iterations < 1:
        raise ValueError("n_power_iterations must be >= 1")

    def _normalize(v):
        return v / (jnp.linalg.norm(v) + eps)

    v = None
    for _ in range(n_power_iterations):
        v = _normalize(w.T @ u)
        u = _normalize(w @ v)
    sigma = u @ (w @ v)
    return w / sigma


if __name__ == "__main__":
    # Small shapes; batch chosen so the row-tiled grid + ragged last block
    # path is exercised (520 % 512 != 0).
    batch, input_dim, hidden_dim = 520, 32, 32

    key = jax.random.PRNGKey(0)
    kx, kw1, kb1, kw3, kb3, ku = jax.random.split(key, 6)

    x = jax.random.normal(kx, (batch, input_dim), dtype=jnp.float32)

    # Deterministic parameter init (PyTorch Linear-style uniform bounds).
    bound1 = 1.0 / (input_dim ** 0.5)
    w1 = jax.random.uniform(kw1, (hidden_dim, input_dim), jnp.float32,
                            -bound1, bound1)          # linear1.weight  [out, in]
    b1 = jax.random.uniform(kb1, (hidden_dim,), jnp.float32, -bound1, bound1)

    bound3 = 1.0 / (hidden_dim ** 0.5)
    w3 = jax.random.uniform(kw3, (1, hidden_dim), jnp.float32,
                            -bound3, bound3)          # linear3.weight  [1, hidden]
    b3 = jax.random.uniform(kb3, (1,), jnp.float32, -bound3, bound3)

    # spectral_norm power-iteration vector u (deterministic).
    u0 = jax.random.normal(ku, (hidden_dim,), jnp.float32)
    u0 = u0 / (jnp.linalg.norm(u0) + 1e-12)
    w1_sn = spectral_normalize(w1, u0)

    # Pure-JAX reference of the same forward math (all f32).
    h_ref = jnp.maximum(x @ w1_sn.T + b1, 0.0)
    y_ref = jax.nn.sigmoid(h_ref @ w3.T + b3)

    # 1) f32 compute path: exact-ish match.
    y_f32 = discriminator_forward(x, w1_sn.T, b1, w3, b3,
                                  compute_dtype=jnp.float32)
    y_f32 = jax.block_until_ready(y_f32)
    assert y_f32.shape == (batch, 1)
    assert jnp.allclose(y_f32, y_ref, atol=1e-5, rtol=1e-5)

    # 2) bf16-operand path (default): looser tolerance (f32 accumulation).
    y = discriminator_forward(x, w1_sn.T, b1, w3, b3)
    y = jax.block_until_ready(y)
    assert y.shape == (batch, 1)
    assert jnp.allclose(y, y_ref, atol=2e-2, rtol=2e-2)

    # 3) Larger ragged batch: exercises the tile-shrink branch (>= 8 grid
    #    steps) and a non-128-multiple lane width in the output block.
    batch2 = 4120
    x2 = jax.random.normal(kx, (batch2, input_dim), dtype=jnp.float32)
    h2_ref = jnp.maximum(x2 @ w1_sn.T + b1, 0.0)
    y2_ref = jax.nn.sigmoid(h2_ref @ w3.T + b3)
    y2 = discriminator_forward(x2, w1_sn.T, b1, w3, b3)
    y2 = jax.block_until_ready(y2)
    assert y2.shape == (batch2, 1)
    assert jnp.allclose(y2, y2_ref, atol=2e-2, rtol=2e-2)

    print("KERNEL_OK")
</pallas_src>

<mosaic_0001>
module attributes {stable_mosaic.version = 11 : i64} {
  func.func @_discriminator_kernel(%arg0: i32, %arg1: memref<512x32xf32, #tpu.memory_space<vmem>>, %arg2: memref<32x32xf32, #tpu.memory_space<vmem>>, %arg3: memref<1x32xf32, #tpu.memory_space<vmem>>, %arg4: memref<1x32xf32, #tpu.memory_space<vmem>>, %arg5: memref<1x1xf32, #tpu.memory_space<vmem>>, %arg6: memref<8x64xf32, #tpu.memory_space<vmem>>) attributes {dimension_semantics = [#tpu.dimension_semantics<parallel>], iteration_bounds = array<i64: 2>, scalar_prefetch = 0 : i64, scratch_operands = 0 : i64, tpu.core_type = #tpu.core_type<tc>, window_params = [{transform_indices = @transform_0, window_bounds = array<i64: 512, 32>}, {pipeline_mode = #tpu.pipeline_mode<synchronous>, transform_indices = @transform_1, window_bounds = array<i64: 32, 32>}, {pipeline_mode = #tpu.pipeline_mode<synchronous>, transform_indices = @transform_2, window_bounds = array<i64: 1, 32>}, {pipeline_mode = #tpu.pipeline_mode<synchronous>, transform_indices = @transform_3, window_bounds = array<i64: 1, 32>}, {pipeline_mode = #tpu.pipeline_mode<synchronous>, transform_indices = @transform_4, window_bounds = array<i64: 1, 1>}, {transform_indices = @transform_5, window_bounds = array<i64: 8, 64>}]} {
    %c0 = arith.constant 0 : index
    %c0_0 = arith.constant 0 : index
    %0 = vector.load %arg1[%c0, %c0_0] : memref<512x32xf32, #tpu.memory_space<vmem>>, vector<512x32xf32>
    %c0_1 = arith.constant 0 : index
    %c0_2 = arith.constant 0 : index
    %1 = vector.load %arg2[%c0_1, %c0_2] : memref<32x32xf32, #tpu.memory_space<vmem>>, vector<32x32xf32>
    %cst = arith.constant dense<0.000000e+00> : vector<512x32xf32>
    %2 = tpu.matmul %0, %1, %cst {dimension_numbers = #tpu.dot_dimension_numbers<[1], [0], [0], [1], [0, 0, 1, 1], [], []>} : vector<512x32xf32>, vector<32x32xf32>, vector<512x32xf32> -> vector<512x32xf32>
    %c0_3 = arith.constant 0 : index
    %c0_4 = arith.constant 0 : index
    %3 = vector.load %arg3[%c0_3, %c0_4] : memref<1x32xf32, #tpu.memory_space<vmem>>, vector<1x32xf32>
    %4 = vector.broadcast %3 : vector<1x32xf32> to vector<512x32xf32>
    %5 = arith.addf %2, %4 : vector<512x32xf32>
    %cst_5 = arith.constant 0.000000e+00 : f32
    %6 = vector.broadcast %cst_5 : f32 to vector<512x32xf32>
    %7 = arith.maximumf %5, %6 : vector<512x32xf32>
    %c0_6 = arith.constant 0 : index
    %c0_7 = arith.constant 0 : index
    %8 = vector.load %arg4[%c0_6, %c0_7] : memref<1x32xf32, #tpu.memory_space<vmem>>, vector<1x32xf32>
    %9 = vector.broadcast %8 : vector<1x32xf32> to vector<512x32xf32>
    %10 = arith.mulf %7, %9 : vector<512x32xf32>
    %cst_8 = arith.constant dense<0.000000e+00> : vector<512xf32>
    %11 = vector.multi_reduction <add>, %10, %cst_8 [1] : vector<512x32xf32> to vector<512xf32>
    %12 = vector.shape_cast %11 : vector<512xf32> to vector<8x64xf32>
    %c0_9 = arith.constant 0 : index
    %c0_10 = arith.constant 0 : index
    %13 = vector.load %arg5[%c0_9, %c0_10] : memref<1x1xf32, #tpu.memory_space<vmem>>, vector<1x1xf32>
    %14 = vector.broadcast %13 : vector<1x1xf32> to vector<8x64xf32>
    %15 = arith.addf %12, %14 : vector<8x64xf32>
    %16 = arith.negf %15 : vector<8x64xf32>
    %17 = math.exp %16 : vector<8x64xf32>
    %cst_11 = arith.constant 1.000000e+00 : f32
    %18 = vector.broadcast %cst_11 : f32 to vector<8x64xf32>
    %19 = arith.addf %18, %17 : vector<8x64xf32>
    %20 = arith.divf %18, %19 : vector<8x64xf32>
    %c0_12 = arith.constant 0 : index
    %c0_13 = arith.constant 0 : index
    %21 = vector.load %arg6[%c0_12, %c0_13] : memref<8x64xf32, #tpu.memory_space<vmem>>, vector<8x64xf32>
    tpu.vector_store %arg6[%c0_12, %c0_13], %20 {strides = array<i32>} : memref<8x64xf32, #tpu.memory_space<vmem>>, vector<8x64xf32>,
    return
  }
  func.func @transform_0(%arg0: i32) -> (i32, i32) {
    %c0_i32 = arith.constant 0 : i32
    %c0_i32_0 = arith.constant 0 : i32
    return %arg0, %c0_i32 : i32, i32
  }
  func.func @transform_1(%arg0: i32) -> (i32, i32) {
    %c0_i32 = arith.constant 0 : i32
    %c0_i32_0 = arith.constant 0 : i32
    %c0_i32_1 = arith.constant 0 : i32
    return %c0_i32, %c0_i32_0 : i32, i32
  }
  func.func @transform_2(%arg0: i32) -> (i32, i32) {
    %c0_i32 = arith.constant 0 : i32
    %c0_i32_0 = arith.constant 0 : i32
    %c0_i32_1 = arith.constant 0 : i32
    return %c0_i32, %c0_i32_0 : i32, i32
  }
  func.func @transform_3(%arg0: i32) -> (i32, i32) {
    %c0_i32 = arith.constant 0 : i32
    %c0_i32_0 = arith.constant 0 : i32
    %c0_i32_1 = arith.constant 0 : i32
    return %c0_i32, %c0_i32_0 : i32, i32
  }
  func.func @transform_4(%arg0: i32) -> (i32, i32) {
    %c0_i32 = arith.constant 0 : i32
    %c0_i32_0 = arith.constant 0 : i32
    %c0_i32_1 = arith.constant 0 : i32
    return %c0_i32, %c0_i32_0 : i32, i32
  }
  func.func @transform_5(%arg0: i32) -> (i32, i32) {
    %c0_i32 = arith.constant 0 : i32
    %c0_i32_0 = arith.constant 0 : i32
    return %arg0, %c0_i32 : i32, i32
  }
}

</mosaic_0001>

<bundles_post_ra>
// kernel: tpu_custom_call.1
= control target key start
LH: loop header
LB: loop body
LE: loop exit
PB: predicated region body
PF: predicated region fallthrough
CT: control target
= control target key end

     0   :  { %s3726_s0 = inlined_call_operand.vmem [shape: f32[520,32], index: 0, kind: input, shape index: {}]   ;;  %s3727_s1 = inlined_call_operand.vmem [shape: f32[32,32], index: 1, kind: input, shape index: {}]   ;;  %s3728_s2 = inlined_call_operand.vmem [shape: f32[1,32], index: 2, kind: input, shape index: {}]   ;;  %s3729_s3 = inlined_call_operand.vmem [shape: f32[1,32], index: 3, kind: input, shape index: {}]   ;;  %s3730_s4 = inlined_call_operand.<no memory space> [shape: f32[1,1], index: 4, kind: input, shape index: {}]   ;;  %s3731_s5 = inlined_call_operand.hbm [shape: f32[16,64], index: 5, kind: output, shape index: {}]  }
   0x1   :  { %v10_v0 = vstv %s3730_s4 }
   0x2   :  { %11 = vst [vmem:[#allocation2] sm:$0x1] %v10_v0 }
   0x3   :  { %12 = vsyncpa [#allocation4], 0 }
   0x4   :  { %14 = vsyncpa [#allocation4 + $0x1], 0  ;;  %s2890_s20 = smov 0   ;;  %s2892_s21 = smov 0  }
   0x5   :  { %s2894_s22 = smov 0   ;;  %s2896_s23 = smov 0  }
   0x6 LB: > { %s2911_s4 = sadd.s32 4294967295, %s2853_s23   ;;  %s2167_s24 = sadd.s32 4294967294, %s2853_s23   ;;  %s2853_s23 = sphi %s2896_s23, %s3737_s23   ;;  %s2849_s22 = sphi %s2894_s22, %s3736_s22   ;;  %s2845_s21 = sphi %s2892_s21, %s3735_s21   ;;  %s2841_s20 = sphi %s2890_s20, %s3734_s20  }
   0x7   : > { %s2915_s25 = sadd.s32 1, %s2853_s23   ;;  %s137_s26 = sadd.s32 1, %s2849_s22 }
   0x8   : > { %s134_s27 = ssub.s32 %s2853_s23, %s2915_s25  ;;  %p147_p0 = scmp.ne.s32.totalorder %s2849_s22, %s2845_s21 }
   0x9   : > { %p135_p1 = scmp.eq.s32.totalorder %s134_s27, 0  ;;  %p148_p2 = scmp.eq.s32.totalorder %s2911_s4, 1 }
   0xa   : > { %p153_p3 = scmp.ne.s32.totalorder %s2845_s21, %s2841_s20  ;;  %p154_p4 = scmp.eq.s32.totalorder %s2167_s24, 1 }
   0xb   : > { %s2926_s28 = scalar_select %p135_p1, %s2849_s22, %s137_s26  }
   0xc   : > { %p2928_p5 = por %p148_p2, %p147_p0  ;;  %p2932_p6 = por %p154_p4, %p153_p3 }
   0xd   : > { %p2170_p7 = scmp.ge.s32.totalorder %s2853_s23, 1  ;;  %p201_p8 = scmp.lt.s32.totalorder %s2853_s23, 3 }
   0xf   : > { %p202_p9 = pnand %p2170_p7, %p201_p8 }
  0x10   : > { %v311_v1 = vld [vmem:[%s3727_s1] sm:$0xff] (!%p202_p9)  ;;  %v312_v2 = vld [vmem:[%s3727_s1 + $0x8] sm:$0xff] (!%p202_p9)  ;;  %v313_v3 = vld [vmem:[%s3727_s1 + $0x10] sm:$0xff] (!%p202_p9)  ;;  %s2172_s12 = sshll.u32 (!%p202_p9), %s2911_s4, 6  ;;  %v2855_v6 = vmov (!%p202_p9), 0   ;;  %vm322_vm0 = vcmask (!%p202_p9), 261120  }
  0x11   : > { %205 = sbr.rel (%p202_p9) target bundleno = 585 (0x249), region = 40  ;;  %v2481_v4 = vpack.c.bf16 (!%p202_p9), %v312_v2, %v311_v1  ;;  %v314_v5 = vld [vmem:[%s3727_s1 + $0x18] sm:$0xff] (!%p202_p9)  ;;  %p238_p10 = scmp.lt.s32.totalorder (!%p202_p9), %s2172_s12, 64  ;;  %2533 = vset.pattern.permute.xlu1 (!%p202_p9), %v2855_v6  ;;  %v2240_v7 = vld [vmem:[#allocation2] ss:$0 sm:$0xff] (!%p202_p9)  ;;  %2534 = vset.pattern.permute.xlu0 (!%p202_p9), %v2855_v6  ;;  %vm1760_vm1 = vcmask (!%p202_p9), 130112  }
  0x12   : > { %v2485_v8 = vpack.c.bf16 (!%p202_p9), %v314_v5, %v313_v3  ;;  %1234 = vperm.xlu1 (!%p202_p9), %2533, %v2240_v7   ;;  %vm1767_vm2 = vcmask (!%p202_p9), 195712   ;;  %vm1774_vm3 = vcmask (!%p202_p9), 261312   ;;  %vm1781_vm4 = vcmask (!%p202_p9), 326912   ;;  %s230_s6 = sand.u32 (!%p202_p9), 1, %s2845_s21   ;;  %s2306_s8 = sshll.u32 (!%p202_p9), %s2911_s4, 7 }
  0x13   : > { %2482 = vmatprep.subr.bf16.mxu0 (!%p202_p9), %v2481_v4  ;;  %2489 = vmatprep.subr.bf16.mxu1 (!%p202_p9), %v2481_v4  ;;  %vm1788_vm5 = vcmask (!%p202_p9), 392512   ;;  %vm1795_vm6 = vcmask (!%p202_p9), 458112   ;;  %vm1802_vm7 = vcmask (!%p202_p9), 523712   ;;  %vm2077_vm8 = vcmask (!%p202_p9), 1041409   ;;  %s3638_s7 = sshll.u32 (!%p202_p9), %s230_s6, 3  ;;  %s2095_s13 = scalar_lea.sflag (!%p202_p9), [#allocation4], %s230_s6 }
  0x14   : > { %2484 = vmatpush3.bf16.msra.mxu0 (!%p202_p9), %v2481_v4  ;;  %2491 = vmatpush3.bf16.msra.mxu1 (!%p202_p9), %v2481_v4  ;;  %vm2079_vm9 = vcmask (!%p202_p9), 1042434   ;;  %vm2081_vm10 = vcmask (!%p202_p9), 1043459   ;;  %vm2083_vm11 = vcmask (!%p202_p9), 1044484   ;;  %vm2085_vm12 = vcmask (!%p202_p9), 1045509   ;;  %s232_s9 = scalar_lea.vmem (!%p202_p9), [#allocation3], %s3638_s7 }
  0x15   : > { %2486 = vmatprep.subr.bf16.mxu0 (!%p202_p9), %v2485_v8  ;;  %2490 = vmatprep.subr.bf16.mxu1 (!%p202_p9), %v2485_v8  ;;  %vm2087_vm13 = vcmask (!%p202_p9), 1046534   ;;  %vm2089_vm14 = vcmask (!%p202_p9), 1047559   ;;  %s2108_s10 = sshll.u32 (!%p202_p9), %s232_s9, 4  ;;  %vm2092_vm15 = vcmask (!%p202_p9), 523264   ;;  %s3683_s10 = int_to_ptr.vmem [resolvable:$true] %s2108_s10 }
  0x16   : > { %s2791_s14 = scalar_lea.vmem (!%p202_p9), %s3683_s10, 128 }
  0x17   : > { %p2792_p11 = scmp.ne.s32.totalorder (!%p202_p9), %s3683_s10, %s2791_s14 }
  0x18   : > { %s3739_s12 = smov (!%p238_p10, %s2172_s12), 64  ;;  %2488 = vmatpush3.bf16.msra.mxu0 %v2485_v8  ;;  %2492 = vmatpush3.bf16.msra.mxu1 %v2485_v8 }
  0x19   : > { %s2173_s15 = sshll.u32 %s3739_s12, 3  ;;  %s3681_s12 = scalar_lea.hbm %s3731_s5, %s2306_s8 }
  0x1a   : > { %s2954_s18 = scalar_lea.vmem %s3726_s0, %s2173_s15  ;;  %p2793_p12 = pnand %p2792_p11, %p2928_p5 }
  0x1b   : > { %v247_v9 = vld [vmem:[%s2954_s18] sm:$0xff]  ;;  %v248_v11 = vld [vmem:[%s2954_s18 + $0x8] sm:$0xff]  ;;  %v249_v13 = vld [vmem:[%s2954_s18 + $0x10] sm:$0xff]  ;;  %s2856_s15 = smov [#allocation3]  }
  0x1c   : > { %v279_v10 = vld [vmem:[%s2954_s18 + $0x100] sm:$0xff]  ;;  %v280_v12 = vld [vmem:[%s2954_s18 + $0x108] sm:$0xff]  ;;  %2385 = vmatprep.mubr.msk.f32.mxu0 %vm322_vm0, %v247_v9  ;;  %v281_v14 = vld [vmem:[%s2954_s18 + $0x110] sm:$0xff]  ;;  %p2794_p13 = pneg %p2793_p12  ;;  %s2795_s16 = sshll.u32 %s2856_s15, 4  ;;  %s2796_s16 = int_to_ptr.vmem [resolvable:$false] %s2795_s16 }
  0x1d   : > { %2433 = vmatprep.mubr.msk.f32.mxu1 %vm322_vm0, %v279_v10  ;;  %2386 = vmatmul.mubr.msk.f32.vlgmr.msra.gmra.mrb[0].mxu0 %vm322_vm0, %v248_v11  ;;  %v250_v15 = vld [vmem:[%s2954_s18 + $0x18] sm:$0xff]  ;;  %v251_v17 = vld [vmem:[%s2954_s18 + $0x20] sm:$0xff]  ;;  %v252_v19 = vld [vmem:[%s2954_s18 + $0x28] sm:$0xff]  ;;  %s2797_s17 = scalar_lea.vmem %s2796_s16, 256  ;;  %p2798_p0 = scmp.lt.s32.totalorder %s3683_s10, %s2796_s16 }
  0x1e   : > { %2434 = vmatmul.mubr.msk.f32.vlgmr.msra.gmra.mrb[0].mxu1 %vm322_vm0, %v280_v12  ;;  %2388 = vmatprep.mubr.msk.f32.mxu0 %vm322_vm0, %v249_v13  ;;  %v282_v16 = vld [vmem:[%s2954_s18 + $0x118] sm:$0xff]  ;;  %v283_v18 = vld [vmem:[%s2954_s18 + $0x120] sm:$0xff]  ;;  %v284_v20 = vld [vmem:[%s2954_s18 + $0x128] sm:$0xff]  ;;  %p2799_p1 = scmp.lt.s32.totalorder %s2797_s17, %s2791_s14 }
  0x1f   : > { %2436 = vmatprep.mubr.msk.f32.mxu1 %vm322_vm0, %v281_v14  ;;  %v253_v21 = vld [vmem:[%s2954_s18 + $0x30] sm:$0xff]  ;;  %v254_v23 = vld [vmem:[%s2954_s18 + $0x38] sm:$0xff]  ;;  %v255_v25 = vld [vmem:[%s2954_s18 + $0x40] sm:$0xff] }
  0x20   : > { %v285_v22 = vld [vmem:[%s2954_s18 + $0x130] sm:$0xff]  ;;  %v286_v24 = vld [vmem:[%s2954_s18 + $0x138] sm:$0xff]  ;;  %v287_v26 = vld [vmem:[%s2954_s18 + $0x140] sm:$0xff]  ;;  %p2800_p2 = por %p2799_p1, %p2798_p0 }
  0x21   : > { %2389 = vmatmul.mubr.msk.f32.gmra.mrb[2].mxu0 %vm322_vm0, %v250_v15  ;;  %v256_v27 = vld [vmem:[%s2954_s18 + $0x48] sm:$0xff]  ;;  %v257_v29 = vld [vmem:[%s2954_s18 + $0x50] sm:$0xff]  ;;  %v258_v31 = vld [vmem:[%s2954_s18 + $0x58] sm:$0xff] }
  0x22   : > { %2437 = vmatmul.mubr.msk.f32.gmra.mrb[2].mxu1 %vm322_vm0, %v282_v16  ;;  %2391 = vmatprep.mubr.msk.f32.mxu0 %vm322_vm0, %v251_v17  ;;  %v288_v28 = vld [vmem:[%s2954_s18 + $0x148] sm:$0xff]  ;;  %v289_v30 = vld [vmem:[%s2954_s18 + $0x150] sm:$0xff]  ;;  %v290_v32 = vld [vmem:[%s2954_s18 + $0x158] sm:$0xff]  ;;  %p2801_p3 = pnand %p2800_p2, %p2794_p13 }
  0x23   : > { %2439 = vmatprep.mubr.msk.f32.mxu1 %vm322_vm0, %v283_v18  ;;  %v291_v33 = vld [vmem:[%s2954_s18 + $0x160] sm:$0xff]  ;;  %v292_v35 = vld [vmem:[%s2954_s18 + $0x168] sm:$0xff]  ;;  %v261_v37 = vld [vmem:[%s2954_s18 + $0x70] sm:$0xff] }
  0x24   : > { %v259_v34 = vld [vmem:[%s2954_s18 + $0x60] sm:$0xff]  ;;  %v260_v36 = vld [vmem:[%s2954_s18 + $0x68] sm:$0xff]  ;;  %v293_v38 = vld [vmem:[%s2954_s18 + $0x170] sm:$0xff] }
  0x25   : > { %2392 = vmatmul.mubr.msk.f32.gmra.mrb[4].mxu0 %vm322_vm0, %v252_v19  ;;  %v262_v39 = vld [vmem:[%s2954_s18 + $0x78] sm:$0xff]  ;;  %v263_v41 = vld [vmem:[%s2954_s18 + $0x80] sm:$0xff]  ;;  %v264_v43 = vld [vmem:[%s2954_s18 + $0x88] sm:$0xff] }
  0x26   : > { %2440 = vmatmul.mubr.msk.f32.gmra.mrb[4].mxu1 %vm322_vm0, %v284_v20  ;;  %2394 = vmatprep.mubr.msk.f32.mxu0 %vm322_vm0, %v253_v21  ;;  %v294_v40 = vld [vmem:[%s2954_s18 + $0x178] sm:$0xff]  ;;  %v295_v42 = vld [vmem:[%s2954_s18 + $0x180] sm:$0xff]  ;;  %v296_v44 = vld [vmem:[%s2954_s18 + $0x188] sm:$0xff] }
  0x27   : > { %2442 = vmatprep.mubr.msk.f32.mxu1 %vm322_vm0, %v285_v22  ;;  %v265_v45 = vld [vmem:[%s2954_s18 + $0x90] sm:$0xff]  ;;  %v266_v47 = vld [vmem:[%s2954_s18 + $0x98] sm:$0xff]  ;;  %v267_v49 = vld [vmem:[%s2954_s18 + $0xa0] sm:$0xff] }
  0x28   : > { %v297_v46 = vld [vmem:[%s2954_s18 + $0x190] sm:$0xff]  ;;  %v298_v48 = vld [vmem:[%s2954_s18 + $0x198] sm:$0xff]  ;;  %v299_v50 = vld [vmem:[%s2954_s18 + $0x1a0] sm:$0xff] }
  0x29   : > { %2395 = vmatmul.mubr.msk.f32.gmra.mrb[6].mxu0 %vm322_vm0, %v254_v23  ;;  %v268_v51 = vld [vmem:[%s2954_s18 + $0xa8] sm:$0xff]  ;;  %v269_v53 = vld [vmem:[%s2954_s18 + $0xb0] sm:$0xff]  ;;  %v270_v55 = vld [vmem:[%s2954_s18 + $0xb8] sm:$0xff] }
  0x2a   : > { %2443 = vmatmul.mubr.msk.f32.gmra.mrb[6].mxu1 %vm322_vm0, %v286_v24  ;;  %2397 = vmatprep.mubr.msk.f32.mxu0 %vm322_vm0, %v255_v25  ;;  %v300_v52 = vld [vmem:[%s2954_s18 + $0x1a8] sm:$0xff]  ;;  %v301_v54 = vld [vmem:[%s2954_s18 + $0x1b0] sm:$0xff]  ;;  %v302_v56 = vld [vmem:[%s2954_s18 + $0x1b8] sm:$0xff] }
  0x2b   : > { %2445 = vmatprep.mubr.msk.f32.mxu1 %vm322_vm0, %v287_v26  ;;  %v271_v57 = vld [vmem:[%s2954_s18 + $0xc0] sm:$0xff]  ;;  %v272_v59 = vld [vmem:[%s2954_s18 + $0xc8] sm:$0xff]  ;;  %v273_v61 = vld [vmem:[%s2954_s18 + $0xd0] sm:$0xff] }
  0x2c   : > { %v303_v58 = vld [vmem:[%s2954_s18 + $0x1c0] sm:$0xff]  ;;  %v304_v60 = vld [vmem:[%s2954_s18 + $0x1c8] sm:$0xff]  ;;  %v305_v62 = vld [vmem:[%s2954_s18 + $0x1d0] sm:$0xff] }
  0x2d   : > { %2398 = vmatmul.mubr.msk.f32.gmra.mrb[8].mxu0 %vm322_vm0, %v256_v27  ;;  %v274_v63 = vld [vmem:[%s2954_s18 + $0xd8] sm:$0xff]  ;;  %v275_v1 = vld [vmem:[%s2954_s18 + $0xe0] sm:$0xff]  ;;  %v276_v3 = vld [vmem:[%s2954_s18 + $0xe8] sm:$0xff] }
  0x2e   : > { %2446 = vmatmul.mubr.msk.f32.gmra.mrb[8].mxu1 %vm322_vm0, %v288_v28  ;;  %2400 = vmatprep.mubr.msk.f32.mxu0 %vm322_vm0, %v257_v29  ;;  %v306_v0 = vld [vmem:[%s2954_s18 + $0x1d8] sm:$0xff]  ;;  %v307_v2 = vld [vmem:[%s2954_s18 + $0x1e0] sm:$0xff]  ;;  %v308_v4 = vld [vmem:[%s2954_s18 + $0x1e8] sm:$0xff] }
  0x2f   : > { %2448 = vmatprep.mubr.msk.f32.mxu1 %vm322_vm0, %v289_v30  ;;  %v309_v5 = vld [vmem:[%s2954_s18 + $0x1f0] sm:$0xff]  ;;  %v310_v7 = vld [vmem:[%s2954_s18 + $0x1f8] sm:$0xff]  ;;  %v3087_v9 = vld [vmem:[%s3728_s2] ss:$0 sm:$0xff] }
  0x30   : > { %v277_v6 = vld [vmem:[%s2954_s18 + $0xf0] sm:$0xff]  ;;  %v278_v8 = vld [vmem:[%s2954_s18 + $0xf8] sm:$0xff]  ;;  %v3095_v17 = vld [vmem:[%s3729_s3] ss:$0 sm:$0xff] }
  0x31   : > { %2401 = vmatmul.mubr.msk.f32.gmra.mrb[10].mxu0 %vm322_vm0, %v258_v31 }
  0x32   : > { %2449 = vmatmul.mubr.msk.f32.gmra.mrb[10].mxu1 %vm322_vm0, %v290_v32  ;;  %2403 = vmatprep.mubr.msk.f32.mxu0 %vm322_vm0, %v259_v34 }
  0x33   : > { %2451 = vmatprep.mubr.msk.f32.mxu1 %vm322_vm0, %v291_v33 }
  0x35   : > { %2404 = vmatmul.mubr.msk.f32.gmra.mrb[12].mxu0 %vm322_vm0, %v260_v36 }
  0x36   : > { %2452 = vmatmul.mubr.msk.f32.gmra.mrb[12].mxu1 %vm322_vm0, %v292_v35  ;;  %2406 = vmatprep.mubr.msk.f32.mxu0 %vm322_vm0, %v261_v37 }
  0x37   : > { %2454 = vmatprep.mubr.msk.f32.mxu1 %vm322_vm0, %v293_v38 }
  0x39   : > { %2407 = vmatmul.mubr.msk.f32.gmra.mrb[14].mxu0 %vm322_vm0, %v262_v39 }
  0x3a   : > { %2455 = vmatmul.mubr.msk.f32.gmra.mrb[14].mxu1 %vm322_vm0, %v294_v40  ;;  %2409 = vmatprep.mubr.msk.f32.mxu0 %vm322_vm0, %v263_v41 }
  0x3b   : > { %2457 = vmatprep.mubr.msk.f32.mxu1 %vm322_vm0, %v295_v42 }
  0x3d   : > { %2410 = vmatmul.mubr.msk.f32.gmra.mrb[16].mxu0 %vm322_vm0, %v264_v43 }
  0x3e   : > { %2458 = vmatmul.mubr.msk.f32.gmra.mrb[16].mxu1 %vm322_vm0, %v296_v44  ;;  %2412 = vmatprep.mubr.msk.f32.mxu0 %vm322_vm0, %v265_v45 }
  0x3f   : > { %2460 = vmatprep.mubr.msk.f32.mxu1 %vm322_vm0, %v297_v46 }
  0x41   : > { %2413 = vmatmul.mubr.msk.f32.gmra.mrb[18].mxu0 %vm322_vm0, %v266_v47 }
  0x42   : > { %2461 = vmatmul.mubr.msk.f32.gmra.mrb[18].mxu1 %vm322_vm0, %v298_v48  ;;  %2415 = vmatprep.mubr.msk.f32.mxu0 %vm322_vm0, %v267_v49 }
  0x43   : > { %2463 = vmatprep.mubr.msk.f32.mxu1 %vm322_vm0, %v299_v50 }
  0x45   : > { %2416 = vmatmul.mubr.msk.f32.gmra.mrb[20].mxu0 %vm322_vm0, %v268_v51 }
  0x46   : > { %2464 = vmatmul.mubr.msk.f32.gmra.mrb[20].mxu1 %vm322_vm0, %v300_v52  ;;  %2418 = vmatprep.mubr.msk.f32.mxu0 %vm322_vm0, %v269_v53 }
  0x47   : > { %2466 = vmatprep.mubr.msk.f32.mxu1 %vm322_vm0, %v301_v54 }
  0x49   : > { %2419 = vmatmul.mubr.msk.f32.gmra.mrb[22].mxu0 %vm322_vm0, %v270_v55 }
  0x4a   : > { %2467 = vmatmul.mubr.msk.f32.gmra.mrb[22].mxu1 %vm322_vm0, %v302_v56  ;;  %2421 = vmatprep.mubr.msk.f32.mxu0 %vm322_vm0, %v271_v57 }
  0x4b   : > { %2469 = vmatprep.mubr.msk.f32.mxu1 %vm322_vm0, %v303_v58 }
  0x4d   : > { %2422 = vmatmul.mubr.msk.f32.gmra.mrb[24].mxu0 %vm322_vm0, %v272_v59 }
  0x4e   : > { %2470 = vmatmul.mubr.msk.f32.gmra.mrb[24].mxu1 %vm322_vm0, %v304_v60  ;;  %2424 = vmatprep.mubr.msk.f32.mxu0 %vm322_vm0, %v273_v61 }
  0x4f   : > { %2472 = vmatprep.mubr.msk.f32.mxu1 %vm322_vm0, %v305_v62 }
  0x51   : > { %2425 = vmatmul.mubr.msk.f32.gmra.mrb[26].mxu0 %vm322_vm0, %v274_v63 }
  0x52   : > { %2473 = vmatmul.mubr.msk.f32.gmra.mrb[26].mxu1 %vm322_vm0, %v306_v0  ;;  %2427 = vmatprep.mubr.msk.f32.mxu0 %vm322_vm0, %v275_v1 }
  0x53   : > { %2475 = vmatprep.mubr.msk.f32.mxu1 %vm322_vm0, %v307_v2 }
  0x55   : > { %2428 = vmatmul.mubr.msk.f32.gmra.mrb[28].mxu0 %vm322_vm0, %v276_v3 }
  0x56   : > { %2476 = vmatmul.mubr.msk.f32.gmra.mrb[28].mxu1 %vm322_vm0, %v308_v4  ;;  %2430 = vmatprep.mubr.msk.f32.mxu0 %vm322_vm0, %v277_v6 }
  0x57   : > { %2478 = vmatprep.mubr.msk.f32.mxu1 %vm322_vm0, %v309_v5 }
  0x59   : > { %2431 = vmatmul.mubr.msk.f32.gmra.mrb[30].mxu0 %vm322_vm0, %v278_v8 }
  0x5a   : > { %2479 = vmatmul.mubr.msk.f32.gmra.mrb[30].mxu1 %vm322_vm0, %v310_v7 }
  0xf0   : > { %v2387_v10 = vpop.f32.mrb[0].mxu0 }
  0xf1   : > { %v2435_v11 = vpop.f32.mrb[0].mxu1  ;;  %v587_v12 = vadd.f32 %v2387_v10, %v3087_v9  ;;  %v581_v14 = vpop.f32.mrb[1].mxu0 }
  0xf2   : > { %v747_v13 = vadd.f32 %v2435_v11, %v3087_v9  ;;  %v741_v15 = vpop.f32.mrb[1].mxu1  ;;  %v582_v20 = vadd.f32 %v3087_v9, %v581_v14 }
  0xf3   : > { %v742_v16 = vadd.f32 %v3087_v9, %v741_v15  ;;  %v901_v18 = vmax.f32 %v587_v12, 0.0 }
  0xf4   : > { %v933_v19 = vmax.f32 %v747_v13, 0.0  ;;  %v2390_v22 = vpop.f32.mrb[2].mxu0  ;;  %v900_v33 = vmax.f32 %v582_v20, 0.0 }
  0xf5   : > { %v932_v21 = vmax.f32 %v742_v16, 0.0  ;;  %v2438_v23 = vpop.f32.mrb[2].mxu1  ;;  %v597_v24 = vadd.f32 %v2390_v22, %v3087_v9  ;;  %v972_v25 = vmul.f32 %v3095_v17, %v901_v18  ;;  %v591_v26 = vpop.f32.mrb[3].mxu0 }
  0xf6   : > { %v757_v27 = vadd.f32 %v2438_v23, %v3087_v9  ;;  %v751_v28 = vpop.f32.mrb[3].mxu1  ;;  %v1004_v29 = vmul.f32 %v3095_v17, %v933_v19  ;;  %v592_v31 = vadd.f32 %v3087_v9, %v591_v26  ;;  %v971_v50 = vmul.f32 %v3095_v17, %v900_v33 }
  0xf7   : > { %v1003_v30 = vmul.f32 %v3095_v17, %v932_v21  ;;  %v752_v32 = vadd.f32 %v3087_v9, %v751_v28  ;;  %v903_v34 = vmax.f32 %v597_v24, 0.0  ;;  %v1038_v35 = vsel %vm322_vm0, %v972_v25, 0.0 }
  0xf8   : > { %1039 = vadd.xlane.f32.xlu0 %v1038_v35  ;;  %v902_v37 = vmax.f32 %v592_v31, 0.0  ;;  %v2393_v38 = vpop.f32.mrb[4].mxu0  ;;  %v935_v40 = vmax.f32 %v757_v27, 0.0  ;;  %v1134_v41 = vsel %vm322_vm0, %v1004_v29, 0.0  ;;  %v1035_v62 = vsel %vm322_vm0, %v971_v50, 0.0 }
  0xf9   : > { %v1131_v36 = vsel %vm322_vm0, %v1003_v30, 0.0  ;;  %v2441_v39 = vpop.f32.mrb[4].mxu1  ;;  %v974_v42 = vmul.f32 %v3095_v17, %v903_v34  ;;  %v601_v43 = vpop.f32.mrb[5].mxu0  ;;  %v934_v45 = vmax.f32 %v752_v32, 0.0  ;;  %v607_v49 = vadd.f32 %v2393_v38, %v3087_v9 }
  0xfa   : > { %1132 = vadd.xlane.f32.xlu1 %v1131_v36  ;;  %v761_v44 = vpop.f32.mrb[5].mxu1  ;;  %v602_v46 = vadd.f32 %v3087_v9, %v601_v43  ;;  %v973_v47 = vmul.f32 %v3095_v17, %v902_v37  ;;  %v1006_v55 = vmul.f32 %v3095_v17, %v935_v40  ;;  %v767_v63 = vadd.f32 %v2441_v39, %v3087_v9 }
  0xfb   : > { %v1044_v48 = vsel %vm322_vm0, %v974_v42, 0.0  ;;  %v762_v54 = vadd.f32 %v3087_v9, %v761_v44  ;;  %v1005_v60 = vmul.f32 %v3095_v17, %v934_v45  ;;  %v905_v61 = vmax.f32 %v607_v49, 0.0 }
  0xfc   : > { %1135 = vadd.xlane.f32.xlu0 %v1134_v41  ;;  %v2396_v51 = vpop.f32.mrb[6].mxu0  ;;  %v904_v53 = vmax.f32 %v602_v46, 0.0  ;;  %v1041_v59 = vsel %vm322_vm0, %v973_v47, 0.0  ;;  %v1140_v7 = vsel %vm322_vm0, %v1006_v55, 0.0  ;;  %v937_v14 = vmax.f32 %v767_v63, 0.0 }
  0xfd   : > { %v2444_v52 = vpop.f32.mrb[6].mxu1  ;;  %v611_v56 = vpop.f32.mrb[7].mxu0  ;;  %v617_v1 = vadd.f32 %v2396_v51, %v3087_v9  ;;  %v936_v6 = vmax.f32 %v762_v54, 0.0  ;;  %v1137_v13 = vsel %vm322_vm0, %v1005_v60, 0.0  ;;  %v976_v15 = vmul.f32 %v3095_v17, %v905_v61 }
  0xfe   : > { %1045 = vadd.xlane.f32.xlu1 %v1044_v48  ;;  %v777_v57 = vadd.f32 %v2444_v52, %v3087_v9  ;;  %v771_v58 = vpop.f32.mrb[7].mxu1  ;;  %v612_v2 = vadd.f32 %v3087_v9, %v611_v56  ;;  %v975_v8 = vmul.f32 %v3095_v17, %v904_v53  ;;  %v1008_v31 = vmul.f32 %v3095_v17, %v937_v14 }
  0xff   : > { %v772_v3 = vadd.f32 %v3087_v9, %v771_v58  ;;  %v907_v16 = vmax.f32 %v617_v1, 0.0  ;;  %v1007_v23 = vmul.f32 %v3095_v17, %v936_v6  ;;  %v1050_v30 = vsel %vm322_vm0, %v976_v15, 0.0 }
 0x100   : > { %v939_v0 = vmax.f32 %v777_v57, 0.0  ;;  %1036 = vadd.xlane.f32.xlu0 %v1035_v62  ;;  %v2399_v4 = vpop.f32.mrb[8].mxu0  ;;  %v906_v18 = vmax.f32 %v612_v2, 0.0  ;;  %v1047_v22 = vsel %vm322_vm0, %v975_v8, 0.0  ;;  %v1146_v48 = vsel %vm322_vm0, %v1008_v31, 0.0 }
 0x101   : > { %v2447_v5 = vpop.f32.mrb[8].mxu1  ;;  %v621_v10 = vpop.f32.mrb[9].mxu0  ;;  %v938_v19 = vmax.f32 %v772_v3, 0.0  ;;  %v627_v24 = vadd.f32 %v2399_v4, %v3087_v9  ;;  %v978_v35 = vmul.f32 %v3095_v17, %v907_v16  ;;  %v1143_v40 = vsel %vm322_vm0, %v1007_v23, 0.0 }
 0x102   : > { %1042 = vadd.xlane.f32.xlu1 %v1041_v59  ;;  %v781_v11 = vpop.f32.mrb[9].mxu1  ;;  %v3127_v12 = vmul.f32 %v3095_v17, %v939_v0  ;;  %v622_v27 = vadd.f32 %v3087_v9, %v621_v10  ;;  %v787_v28 = vadd.f32 %v2447_v5, %v3087_v9  ;;  %v977_v34 = vmul.f32 %v3095_v17, %v906_v18 }
 0x103   : > { %v782_v29 = vadd.f32 %v3087_v9, %v781_v11  ;;  %v1009_v36 = vmul.f32 %v3095_v17, %v938_v19  ;;  %v909_v41 = vmax.f32 %v627_v24, 0.0  ;;  %v1056_v52 = vsel %vm322_vm0, %v978_v35, 0.0 }
 0x104   : > { %1141 = vadd.xlane.f32.xlu0 %v1140_v7  ;;  %v2402_v20 = vpop.f32.mrb[10].mxu0  ;;  %v908_v45 = vmax.f32 %v622_v27, 0.0  ;;  %v941_v46 = vmax.f32 %v787_v28, 0.0  ;;  %v1053_v51 = vsel %vm322_vm0, %v977_v34, 0.0 }
 0x105   : > { %v2450_v21 = vpop.f32.mrb[10].mxu1  ;;  %v631_v25 = vpop.f32.mrb[11].mxu0  ;;  %v637_v32 = vadd.f32 %v2402_v20, %v3087_v9  ;;  %v940_v47 = vmax.f32 %v782_v29, 0.0  ;;  %v1149_v53 = vsel %vm322_vm0, %v1009_v36, 0.0  ;;  %v980_v57 = vmul.f32 %v3095_v17, %v909_v41 }
 0x106   : > { %1138 = vadd.xlane.f32.xlu1 %v1137_v13  ;;  %v791_v26 = vpop.f32.mrb[11].mxu1  ;;  %v797_v33 = vadd.f32 %v2450_v21, %v3087_v9  ;;  %v632_v37 = vadd.f32 %v3087_v9, %v631_v25  ;;  %v979_v63 = vmul.f32 %v3095_v17, %v908_v45  ;;  %v1012_v0 = vmul.f32 %v3095_v17, %v941_v46 }
 0x107   : > { %v792_v42 = vadd.f32 %v3087_v9, %v791_v26  ;;  %v911_v49 = vmax.f32 %v637_v32, 0.0  ;;  %v1011_v1 = vmul.f32 %v3095_v17, %v940_v47  ;;  %v1062_v15 = vsel %vm322_vm0, %v980_v57, 0.0 }
 0x108   : > { %1048 = vadd.xlane.f32.xlu0 %v1047_v22  ;;  %v2405_v39 = vpop.f32.mrb[12].mxu0  ;;  %v943_v50 = vmax.f32 %v797_v33, 0.0  ;;  %v910_v54 = vmax.f32 %v632_v37, 0.0  ;;  %v1059_v22 = vsel %vm322_vm0, %v979_v63, 0.0  ;;  %v1158_v23 = vsel %vm322_vm0, %v1012_v0, 0.0 }
 0x109   : > { %v2453_v38 = vpop.f32.mrb[12].mxu1  ;;  %v641_v44 = vpop.f32.mrb[13].mxu0  ;;  %v942_v58 = vmax.f32 %v792_v42, 0.0  ;;  %v982_v3 = vmul.f32 %v3095_v17, %v911_v49  ;;  %v647_v4 = vadd.f32 %v2405_v39, %v3087_v9  ;;  %v1155_v26 = vsel %vm322_vm0, %v1011_v1, 0.0 }
 0x10a   : > { %1051 = vadd.xlane.f32.xlu1 %v1050_v30  ;;  %v801_v43 = vpop.f32.mrb[13].mxu1  ;;  %v807_v59 = vadd.f32 %v2453_v38, %v3087_v9  ;;  %v1014_v5 = vmul.f32 %v3095_v17, %v943_v50  ;;  %v642_v8 = vadd.f32 %v3087_v9, %v641_v44  ;;  %v981_v10 = vmul.f32 %v3095_v17, %v910_v54 }
 0x10b   : > { %v802_v7 = vadd.f32 %v3087_v9, %v801_v43  ;;  %v1013_v18 = vmul.f32 %v3095_v17, %v942_v58  ;;  %v1068_v27 = vsel %vm322_vm0, %v982_v3, 0.0  ;;  %v913_v28 = vmax.f32 %v647_v4, 0.0 }
 0x10c   : > { %1144 = vadd.xlane.f32.xlu0 %v1143_v40  ;;  %v2408_v55 = vpop.f32.mrb[14].mxu0  ;;  %v945_v16 = vmax.f32 %v807_v59, 0.0  ;;  %v3184_v29 = vsel %vm322_vm0, %v1014_v5, 0.0  ;;  %v912_v31 = vmax.f32 %v642_v8, 0.0  ;;  %v1065_v32 = vsel %vm322_vm0, %v981_v10, 0.0 }
 0x10d   : > { %v2456_v56 = vpop.f32.mrb[14].mxu1  ;;  %v651_v60 = vpop.f32.mrb[15].mxu0  ;;  %v944_v30 = vmax.f32 %v802_v7, 0.0  ;;  %v3189_v37 = vsel %vm322_vm0, %v1013_v18, 0.0  ;;  %v3194_v42 = vadd.f32 %v2408_v55, %v3087_v9  ;;  %v984_v47 = vmul.f32 %v3095_v17, %v913_v28 }
 0x10e   : > { %1147 = vadd.xlane.f32.xlu1 %v1146_v48  ;;  %v817_v61 = vadd.f32 %v2456_v56, %v3087_v9  ;;  %v811_v62 = vpop.f32.mrb[15].mxu1  ;;  %v1016_v36 = vmul.f32 %v3095_v17, %v945_v16  ;;  %v3202_v46 = vadd.f32 %v3087_v9, %v651_v60  ;;  %v983_v50 = vmul.f32 %v3095_v17, %v912_v31 }
 0x10f   : > { %v812_v2 = vadd.f32 %v3087_v9, %v811_v62  ;;  %v915_v3 = vmax.f32 %v3194_v42, 0.0  ;;  %v3227_v7 = vsel %vm322_vm0, %v984_v47, 0.0 }
 0x110   : > { %v947_v6 = vmax.f32 %v817_v61, 0.0  ;;  %1054 = vadd.xlane.f32.xlu0 %v1053_v51  ;;  %v3164_v11 = vpop.f32.mrb[16].mxu0  ;;  %v1015_v51 = vmul.f32 %v3095_v17, %v944_v30  ;;  %v1071_v31 = vsel %vm322_vm0, %v983_v50, 0.0 }
 0x111   : > { %v946_v13 = vmax.f32 %v812_v2, 0.0  ;;  %v3166_v14 = vpop.f32.mrb[16].mxu1  ;;  %v3170_v19 = vpop.f32.mrb[17].mxu0  ;;  %v1170_v2 = vsel %vm322_vm0, %v1016_v36, 0.0  ;;  %v667_v36 = vadd.f32 %v3164_v11, %v3087_v9 }
 0x112   : > { %1057 = vadd.xlane.f32.xlu1 %v1056_v52  ;;  %v821_v20 = vpop.f32.mrb[17].mxu1  ;;  %v3173_v21 = vmul.f32 %v3095_v17, %v947_v6  ;;  %v914_v6 = vmax.f32 %v3202_v46, 0.0  ;;  %v662_v50 = vadd.f32 %v3087_v9, %v3170_v19 }
 0x113   : > { %v822_v24 = vadd.f32 %v3087_v9, %v821_v20  ;;  %v3179_v25 = vmul.f32 %v3095_v17, %v946_v13 }
 0x114   : > { %1150 = vadd.xlane.f32.xlu0 %v1149_v53  ;;  %v2414_v34 = vpop.f32.mrb[18].mxu0 }
 0x115   : > { %v948_v33 = vmax.f32 %v822_v24, 0.0  ;;  %v2462_v35 = vpop.f32.mrb[18].mxu1  ;;  %v677_v38 = vadd.f32 %v2414_v34, %v3087_v9  ;;  %v671_v39 = vpop.f32.mrb[19].mxu0 }
 0x116   : > { %1063 = vadd.xlane.f32.xlu1 %v1062_v15  ;;  %v837_v40 = vadd.f32 %v2462_v35, %v3087_v9  ;;  %v831_v41 = vpop.f32.mrb[19].mxu1  ;;  %v672_v43 = vadd.f32 %v3087_v9, %v671_v39 }
 0x117   : > { %v832_v44 = vadd.f32 %v3087_v9, %v831_v41  ;;  %v3199_v45 = vmul.f32 %v3095_v17, %v948_v33  ;;  %v919_v48 = vmax.f32 %v677_v38, 0.0  ;;  %v3247_v33 = vsel %vm322_vm0, %v1015_v51, 0.0 }
 0x118   : > { %v951_v49 = vmax.f32 %v837_v40, 0.0  ;;  %1060 = vadd.xlane.f32.xlu0 %v1059_v22  ;;  %v918_v52 = vmax.f32 %v672_v43, 0.0  ;;  %v2417_v54 = vpop.f32.mrb[20].mxu0  ;;  %v827_v38 = vadd.f32 %v3166_v14, %v3087_v9  ;;  %v986_v51 = vmul.f32 %v3095_v17, %v915_v3 }
 0x119   : > { %v950_v53 = vmax.f32 %v832_v44, 0.0  ;;  %v2465_v55 = vpop.f32.mrb[20].mxu1  ;;  %v687_v56 = vadd.f32 %v2417_v54, %v3087_v9  ;;  %v681_v57 = vpop.f32.mrb[21].mxu0  ;;  %v3209_v58 = vmul.f32 %v3095_v17, %v919_v48  ;;  %v917_v54 = vmax.f32 %v667_v36, 0.0 }
 0x11a   : > { %1159 = vadd.xlane.f32.xlu1 %v1158_v23  ;;  %v3212_v59 = vmul.f32 %v3095_v17, %v951_v49  ;;  %v847_v60 = vadd.f32 %v2465_v55, %v3087_v9  ;;  %v841_v61 = vpop.f32.mrb[21].mxu1  ;;  %v682_v62 = vadd.f32 %v3087_v9, %v681_v57  ;;  %v3217_v63 = vmul.f32 %v3095_v17, %v918_v52 }
 0x11b   : > { %v842_v0 = vadd.f32 %v3087_v9, %v841_v61  ;;  %v3221_v1 = vmul.f32 %v3095_v17, %v950_v53  ;;  %v921_v4 = vmax.f32 %v687_v56, 0.0  ;;  %v985_v55 = vmul.f32 %v3095_v17, %v914_v6 }
 0x11c   : > { %v953_v5 = vmax.f32 %v847_v60, 0.0  ;;  %1156 = vadd.xlane.f32.xlu0 %v1155_v26  ;;  %v920_v8 = vmax.f32 %v682_v62, 0.0  ;;  %v2420_v10 = vpop.f32.mrb[22].mxu0 }
 0x11d   : > { %v952_v13 = vmax.f32 %v842_v0, 0.0  ;;  %v2468_v15 = vpop.f32.mrb[22].mxu1  ;;  %v697_v16 = vadd.f32 %v2420_v10, %v3087_v9  ;;  %v691_v18 = vpop.f32.mrb[23].mxu0  ;;  %v3232_v23 = vmul.f32 %v3095_v17, %v921_v4  ;;  %v949_v10 = vmax.f32 %v827_v38, 0.0 }
 0x11e   : > { %1069 = vadd.xlane.f32.xlu1 %v1068_v27  ;;  %v857_v20 = vadd.f32 %v2468_v15, %v3087_v9  ;;  %v851_v22 = vpop.f32.mrb[23].mxu1  ;;  %v3235_v24 = vmul.f32 %v3095_v17, %v953_v5  ;;  %v692_v26 = vadd.f32 %v3087_v9, %v691_v18  ;;  %v3239_v28 = vmul.f32 %v3095_v17, %v920_v8 }
 0x11f   : > { %v852_v30 = vadd.f32 %v3087_v9, %v851_v22  ;;  %v3243_v27 = vmul.f32 %v3095_v17, %v952_v13  ;;  %v923_v34 = vmax.f32 %v697_v16, 0.0  ;;  %v1080_v13 = vsel %vm322_vm0, %v986_v51, 0.0 }
 0x120   : > { %v955_v35 = vmax.f32 %v857_v20, 0.0  ;;  %1066 = vadd.xlane.f32.xlu0 %v1065_v32  ;;  %v922_v39 = vmax.f32 %v692_v26, 0.0  ;;  %v2423_v40 = vpop.f32.mrb[24].mxu0  ;;  %v916_v18 = vmax.f32 %v662_v50, 0.0  ;;  %v988_v20 = vmul.f32 %v3095_v17, %v917_v54 }
 0x121   : > { %v954_v41 = vmax.f32 %v852_v30, 0.0  ;;  %v2471_v42 = vpop.f32.mrb[24].mxu1  ;;  %v707_v43 = vadd.f32 %v2423_v40, %v3087_v9  ;;  %v701_v44 = vpop.f32.mrb[25].mxu0  ;;  %v3257_v32 = vmul.f32 %v3095_v17, %v923_v34 }
 0x122   : > { %1165 = vadd.xlane.f32.xlu1 %v3184_v29  ;;  %v867_v46 = vadd.f32 %v2471_v42, %v3087_v9  ;;  %v861_v47 = vpop.f32.mrb[25].mxu1  ;;  %v3260_v11 = vmul.f32 %v3095_v17, %v955_v35  ;;  %v702_v14 = vadd.f32 %v3087_v9, %v701_v44  ;;  %v3265_v49 = vmul.f32 %v3095_v17, %v922_v39 }
 0x123   : > { %v862_v48 = vadd.f32 %v3087_v9, %v861_v47  ;;  %v3268_v29 = vmul.f32 %v3095_v17, %v954_v41  ;;  %v925_v52 = vmax.f32 %v707_v43, 0.0  ;;  %v1077_v44 = vsel %vm322_vm0, %v985_v55, 0.0 }
 0x124   : > { %v957_v53 = vmax.f32 %v867_v46, 0.0  ;;  %1171 = vadd.xlane.f32.xlu0 %v1170_v2  ;;  %v924_v56 = vmax.f32 %v702_v14, 0.0  ;;  %v2426_v60 = vpop.f32.mrb[26].mxu0  ;;  %v1020_v46 = vmul.f32 %v3095_v17, %v949_v10  ;;  %v987_v50 = vmul.f32 %v3095_v17, %v916_v18 }
 0x125   : > { %v956_v57 = vmax.f32 %v862_v48, 0.0  ;;  %v2474_v61 = vpop.f32.mrb[26].mxu1  ;;  %v717_v62 = vadd.f32 %v2426_v60, %v3087_v9  ;;  %v711_v0 = vpop.f32.mrb[27].mxu0  ;;  %v3277_v4 = vmul.f32 %v3095_v17, %v925_v52  ;;  %v1086_v48 = vsel %vm322_vm0, %v988_v20, 0.0 }
 0x126   : > { %1162 = vadd.xlane.f32.xlu1 %v3189_v37  ;;  %v877_v19 = vadd.f32 %v2474_v61, %v3087_v9  ;;  %v871_v3 = vpop.f32.mrb[27].mxu1  ;;  %v3281_v2 = vmul.f32 %v3095_v17, %v957_v53  ;;  %v712_v5 = vadd.f32 %v3087_v9, %v711_v0  ;;  %v3285_v6 = vmul.f32 %v3095_v17, %v924_v56 }
 0x127   : > { %v3288_v8 = vmul.f32 %v3095_v17, %v956_v57  ;;  %v872_v37 = vadd.f32 %v3087_v9, %v871_v3  ;;  %v927_v15 = vmax.f32 %v717_v62, 0.0  ;;  %v1182_v20 = vsel %vm322_vm0, %v1020_v46, 0.0 }
 0x128   : > { %v959_v16 = vmax.f32 %v877_v19, 0.0  ;;  %1072 = vadd.xlane.f32.xlu0 %v1071_v31  ;;  %v926_v22 = vmax.f32 %v712_v5, 0.0  ;;  %v2429_v26 = vpop.f32.mrb[28].mxu0 }
 0x129   : > { %v958_v30 = vmax.f32 %v872_v37, 0.0  ;;  %v2477_v34 = vpop.f32.mrb[28].mxu1  ;;  %v727_v35 = vadd.f32 %v2429_v26, %v3087_v9  ;;  %v721_v36 = vpop.f32.mrb[29].mxu0  ;;  %v3297_v40 = vmul.f32 %v3095_v17, %v927_v15  ;;  %v1083_v15 = vsel %vm322_vm0, %v987_v50, 0.0 }
 0x12a   : > { %1075 = vadd.xlane.f32.xlu1 %v3227_v7  ;;  %v887_v39 = vadd.f32 %v2477_v34, %v3087_v9  ;;  %v881_v38 = vpop.f32.mrb[29].mxu1  ;;  %v3300_v31 = vmul.f32 %v3095_v17, %v959_v16  ;;  %v722_v41 = vadd.f32 %v3087_v9, %v721_v36  ;;  %v3305_v43 = vmul.f32 %v3095_v17, %v926_v22 }
 0x12b   : > { %v882_v42 = vadd.f32 %v3087_v9, %v881_v38  ;;  %v3308_v7 = vmul.f32 %v3095_v17, %v958_v30  ;;  %v929_v47 = vmax.f32 %v727_v35, 0.0  ;;  %v1179_v26 = vsel %vm322_vm0, %v3199_v45, 0.0 }
 0x12c   : > { %v961_v14 = vmax.f32 %v887_v39, 0.0  ;;  %1168 = vadd.xlane.f32.xlu0 %v3247_v33  ;;  %v928_v51 = vmax.f32 %v722_v41, 0.0  ;;  %v2432_v54 = vpop.f32.mrb[30].mxu0  ;;  %v1092_v30 = vsel %vm322_vm0, %v3209_v58, 0.0  ;;  %v1089_v34 = vsel %vm322_vm0, %v3217_v63, 0.0 }
 0x12d   : > { %v960_v52 = vmax.f32 %v882_v42, 0.0  ;;  %v2480_v53 = vpop.f32.mrb[30].mxu1  ;;  %v1000_v56 = vmul.f32 %v3095_v17, %v929_v47  ;;  %v737_v60 = vadd.f32 %v2432_v54, %v3087_v9  ;;  %v731_v61 = vpop.f32.mrb[31].mxu0  ;;  %v1188_v35 = vsel %vm322_vm0, %v3212_v59, 0.0 }
 0x12e   : > { %1081 = vadd.xlane.f32.xlu1 %v1080_v13  ;;  %v897_v57 = vadd.f32 %v2480_v53, %v3087_v9  ;;  %v3318_v55 = vmul.f32 %v3095_v17, %v961_v14  ;;  %v891_v33 = vpop.f32.mrb[31].mxu1  ;;  %v999_v62 = vmul.f32 %v3095_v17, %v928_v51  ;;  %v732_v0 = vadd.f32 %v3087_v9, %v731_v61 }
 0x12f   : > { %v3324_v19 = vmul.f32 %v3095_v17, %v960_v52  ;;  %v892_v3 = vadd.f32 %v3087_v9, %v891_v33  ;;  %v931_v37 = vmax.f32 %v737_v60, 0.0  ;;  %v1095_v36 = vsel %vm322_vm0, %v3239_v28, 0.0 }
 0x130   : > { %v963_v5 = vmax.f32 %v897_v57, 0.0  ;;  %1078 = vadd.xlane.f32.xlu0 %v1077_v44  ;;  %v930_v10 = vmax.f32 %v732_v0, 0.0  ;;  %v1098_v45 = vsel %vm322_vm0, %v3232_v23, 0.0  ;;  %v1104_v58 = vsel %vm322_vm0, %v3257_v32, 0.0 }
 0x131   : > { %v962_v13 = vmax.f32 %v892_v3, 0.0  ;;  %v3330_v18 = vmul.f32 %v3095_v17, %v931_v37  ;;  %v1191_v59 = vsel %vm322_vm0, %v3243_v27, 0.0  ;;  %v1107_v63 = vsel %vm322_vm0, %v3285_v6, 0.0 }
 0x132   : > { %1087 = vadd.xlane.f32.xlu1 %v1086_v48  ;;  %v1034_v16 = vmul.f32 %v3095_v17, %v963_v5  ;;  %v3334_v22 = vmul.f32 %v3095_v17, %v930_v10  ;;  %v1203_v28 = vsel %vm322_vm0, %v3288_v8, 0.0  ;;  %v1110_v23 = vsel %vm322_vm0, %v3277_v4, 0.0 }
 0x133   : > { %v3337_v9 = vmul.f32 %v3095_v17, %v962_v13  ;;  %v1185_v17 = vsel %vm322_vm0, %v3221_v1, 0.0  ;;  %v1101_v1 = vsel %vm322_vm0, %v3265_v49, 0.0  ;;  %v1122_v32 = vsel %vm322_vm0, %v1000_v56, 0.0 }
 0x134   : > { %1084 = vadd.xlane.f32.xlu0 %v1083_v15  ;;  %v1206_v27 = vsel %vm322_vm0, %v3281_v2, 0.0  ;;  %v1119_v6 = vsel %vm322_vm0, %v999_v62, 0.0  ;;  %v1116_v49 = vsel %vm322_vm0, %v3297_v40, 0.0  ;;  %v1212_v8 = vsel %vm322_vm0, %v3300_v31, 0.0 }
 0x135   : > { %v1224_v4 = vsel %vm322_vm0, %v1034_v16, 0.0  ;;  %v1113_v39 = vsel %vm322_vm0, %v3305_v43, 0.0  ;;  %v1209_v2 = vsel %vm322_vm0, %v3308_v7, 0.0  ;;  %v1152_v38 = vsel %vm322_vm0, %v3127_v12, 0.0  ;;  %v3394_v43 = vpop.permute.xlu1 %1234 }
 0x136   : > { %1183 = vadd.xlane.f32.xlu1 %v1182_v20  ;;  %v1173_v40 = vsel %vm322_vm0, %v3179_v25, 0.0  ;;  %v1194_v31 = vsel %vm322_vm0, %v3235_v24, 0.0  ;;  %v1176_v41 = vsel %vm322_vm0, %v3173_v21, 0.0  ;;  %v1197_v42 = vsel %vm322_vm0, %v3268_v29, 0.0 }
 0x137   : > { %v1218_v12 = vsel %vm322_vm0, %v3318_v55, 0.0  ;;  %v1200_v25 = vsel %vm322_vm0, %v3260_v11, 0.0  ;;  %v1215_v24 = vsel %vm322_vm0, %v3324_v19, 0.0  ;;  %v1128_v21 = vsel %vm322_vm0, %v3330_v18, 0.0 }
 0x138   : > { %1180 = vadd.xlane.f32.xlu0 %v1179_v26  ;;  %v1125_v11 = vsel %vm322_vm0, %v3334_v22, 0.0  ;;  %v1221_v50 = vsel %vm322_vm0, %v3337_v9, 0.0 }
 0x13a   : > { %1093 = vadd.xlane.f32.xlu1 %v1092_v30 }
 0x13c   : > { %1090 = vadd.xlane.f32.xlu0 %v1089_v34  ;;  %v1749_v34 = vlaneseq }
 0x13e   : > { %1189 = vadd.xlane.f32.xlu1 %v1188_v35 }
 0x140   : > { %1186 = vadd.xlane.f32.xlu0 %v1185_v17 }
 0x142   : > { %1096 = vadd.xlane.f32.xlu1 %v1095_v36 }
 0x144   : > { %1099 = vadd.xlane.f32.xlu0 %v1098_v45 }
 0x146   : > { %1105 = vadd.xlane.f32.xlu1 %v1104_v58 }
 0x148   : > { %1192 = vadd.xlane.f32.xlu0 %v1191_v59 }
 0x14a   : > { %1108 = vadd.xlane.f32.xlu1 %v1107_v63 }
 0x14c   : > { %1102 = vadd.xlane.f32.xlu0 %v1101_v1 }
 0x14e   : > { %1204 = vadd.xlane.f32.xlu1 %v1203_v28 }
 0x150   : > { %1111 = vadd.xlane.f32.xlu0 %v1110_v23 }
 0x152   : > { %1123 = vadd.xlane.f32.xlu1 %v1122_v32  ;;  %v3414_v32 = vand.u32 127, %v1749_v34 }
 0x154   : > { %1207 = vadd.xlane.f32.xlu0 %v1206_v27 }
 0x156   : > { %1120 = vadd.xlane.f32.xlu1 %v1119_v6 }
 0x158   : > { %1117 = vadd.xlane.f32.xlu0 %v1116_v49 }
 0x15a   : > { %1213 = vadd.xlane.f32.xlu1 %v1212_v8 }
 0x15c   : > { %1114 = vadd.xlane.f32.xlu0 %v1113_v39  ;;  %v3416_v39 = vshrl.u32 %v1749_v34, 7 }
 0x15e   : > { %1225 = vadd.xlane.f32.xlu1 %v1224_v4 }
 0x160   : > { %1210 = vadd.xlane.f32.xlu0 %v1209_v2 }
 0x164   : > { %1153 = vadd.xlane.f32.xlu0 %v1152_v38 }
 0x168   : > { %1174 = vadd.xlane.f32.xlu0 %v1173_v40 }
 0x16c   : > { %1195 = vadd.xlane.f32.xlu0 %v1194_v31 }
 0x170   : > { %1177 = vadd.xlane.f32.xlu0 %v1176_v41 }
 0x174   : > { %1198 = vadd.xlane.f32.xlu0 %v1197_v42  ;;  %v1755_v42 = vadd.s32 4294967288, %v3414_v32 }
 0x178   : > { %1219 = vadd.xlane.f32.xlu0 %v1218_v12 }
 0x17c   : > { %1201 = vadd.xlane.f32.xlu0 %v1200_v25 }
 0x180   : > { %1216 = vadd.xlane.f32.xlu0 %v1215_v24 }
 0x184   : > { %1129 = vadd.xlane.f32.xlu0 %v1128_v21 }
 0x185   : > { %v1040_v29 = vpop.xlane.xlu0 %1039 }
 0x186   : > { %v1238_v7 = vadd.f32 %v3394_v43, %v1040_v29 }
 0x187   : > { %v1133_v44 = vpop.xlane.xlu1 %1132 }
 0x188   : > { %v1269_v46 = vadd.f32 %v3394_v43, %v1133_v44  ;;  %v2242_v47 = vmul.f32 -1.442695, %v1238_v7  ;;  %1126 = vadd.xlane.f32.xlu0 %v1125_v11  ;;  %v3425_v44 = vsub.s32 %v3414_v32, %v3416_v39 }
 0x189   : > { %v1136_v48 = vpop.xlane.xlu0 %1135 }
 0x18a   : > { %v2273_v14 = vmul.f32 -1.442695, %v1269_v46  ;;  %2535 = vpow2.f32 %v2242_v47  ;;  %v1270_v51 = vadd.f32 %v3394_v43, %v1136_v48  ;;  %v1762_v48 = vadd.s32 4294967280, %v3414_v32 }
 0x18b   : > { %v1046_v52 = vpop.xlane.xlu1 %1045 }
 0x18c   : > { %2537 = vpow2.f32 %v2273_v14  ;;  %v1240_v53 = vadd.f32 %v3394_v43, %v1046_v52  ;;  %v2274_v54 = vmul.f32 -1.442695, %v1270_v51  ;;  %1222 = vadd.xlane.f32.xlu0 %v1221_v50  ;;  %v1769_v14 = vadd.s32 4294967272, %v3414_v32 }
 0x18d   : > { %v1037_v57 = vpop.xlane.xlu0 %1036  ;;  %v1776_v50 = vadd.s32 4294967264, %v3414_v32 }
 0x18e   : > { %v2244_v56 = vmul.f32 -1.442695, %v1240_v53  ;;  %2539 = vpow2.f32 %v2274_v54  ;;  %v1237_v55 = vadd.f32 %v3394_v43, %v1037_v57  ;;  %v3433_v53 = vsub.s32 %v1755_v42, %v3416_v39 }
 0x18f   : > { %v1043_v60 = vpop.xlane.xlu1 %1042 }
 0x190   : > { %2541 = vpow2.f32 %v2244_v56  ;;  %v1239_v61 = vadd.f32 %v3394_v43, %v1043_v60  ;;  %v2241_v33 = vmul.f32 -1.442695, %v1237_v55  ;;  %v1783_v60 = vadd.s32 4294967256, %v3414_v32 }
 0x191   : > { %v1142_v0 = vpop.xlane.xlu0 %1141 }
 0x192   : > { %v2243_v62 = vmul.f32 -1.442695, %v1239_v61  ;;  %2543 = vpow2.f32 %v2241_v33  ;;  %v1272_v19 = vadd.f32 %v3394_v43, %v1142_v0 }
 0x193   : > { %v1139_v3 = vpop.xlane.xlu1 %1138 }
 0x194   : > { %2545 = vpow2.f32 %v2243_v62  ;;  %v1271_v5 = vadd.f32 %v3394_v43, %v1139_v3  ;;  %v2536_v37 = vpop.eup %2535  ;;  %v2276_v10 = vmul.f32 -1.442695, %v1272_v19 }
 0x195   : > { %v1494_v15 = vadd.f32 1.0, %v2536_v37  ;;  %v1049_v18 = vpop.xlane.xlu0 %1048 }
 0x196   : > { %v2538_v13 = vpop.eup %2537  ;;  %v2275_v16 = vmul.f32 -1.442695, %v1271_v5  ;;  %2547 = vpow2.f32 %v2276_v10  ;;  %v1241_v22 = vadd.f32 %v3394_v43, %v1049_v18  ;;  %v3440_v10 = vsub.s32 %v1769_v14, %v3416_v39 }
 0x197   : > { %v1525_v20 = vadd.f32 1.0, %v2538_v13  ;;  %v1052_v9 = vpop.xlane.xlu1 %1051  ;;  %2549 = vrcp.f32 %v1494_v15  ;;  %v3443_v13 = vsub.s32 %v1762_v48, %v3416_v39 }
 0x198   : > { %v1242_v26 = vadd.f32 %v3394_v43, %v1052_v9  ;;  %v2540_v30 = vpop.eup %2539  ;;  %v2245_v35 = vmul.f32 -1.442695, %v1241_v22 }
 0x199   : > { %2551 = vrcp.f32 %v1525_v20  ;;  %v1526_v36 = vadd.f32 1.0, %v2540_v30  ;;  %v1145_v58 = vpop.xlane.xlu0 %1144 }
 0x19a   : > { %v2542_v17 = vpop.eup %2541  ;;  %2553 = vpow2.f32 %v2275_v16  ;;  %v2246_v45 = vmul.f32 -1.442695, %v1242_v26  ;;  %v1273_v63 = vadd.f32 %v3394_v43, %v1145_v58  ;;  %v3448_v26 = vsub.s32 %v1776_v50, %v3416_v39 }
 0x19b   : > { %v1496_v59 = vadd.f32 1.0, %v2542_v17  ;;  %2555 = vpow2.f32 %v2245_v35  ;;  %v1148_v1 = vpop.xlane.xlu1 %1147 }
 0x19c   : > { %2557 = vrcp.f32 %v1526_v36  ;;  %v1274_v28 = vadd.f32 %v3394_v43, %v1148_v1  ;;  %v2544_v23 = vpop.eup %2543  ;;  %v2277_v27 = vmul.f32 -1.442695, %v1273_v63 }
 0x19d   : > { %2559 = vrcp.f32 %v1496_v59  ;;  %v1493_v49 = vadd.f32 1.0, %v2544_v23  ;;  %v1055_v4 = vpop.xlane.xlu0 %1054 }
 0x19e   : > { %v2546_v6 = vpop.eup %2545  ;;  %2561 = vpow2.f32 %v2246_v45  ;;  %v2278_v8 = vmul.f32 -1.442695, %v1274_v28  ;;  %v1243_v38 = vadd.f32 %v3394_v43, %v1055_v4 }
 0x19f   : > { %v1495_v2 = vadd.f32 1.0, %v2546_v6  ;;  %2563 = vpow2.f32 %v2277_v27  ;;  %v1058_v40 = vpop.xlane.xlu1 %1057 }
 0x1a0   : > { %2565 = vrcp.f32 %v1493_v49  ;;  %v1244_v31 = vadd.f32 %v3394_v43, %v1058_v40  ;;  %v2548_v41 = vpop.eup %2547  ;;  %v2247_v12 = vmul.f32 -1.442695, %v1243_v38 }
 0x1a1   : > { %2567 = vrcp.f32 %v1495_v2  ;;  %v3421_v25 = vpop.eup %2549  ;;  %v1528_v24 = vadd.f32 1.0, %v2548_v41  ;;  %v1151_v29 = vpop.xlane.xlu0 %1150  ;;  %v1790_v2 = vadd.s32 4294967248, %v3414_v32 }
 0x1a2   : > { %2569 = vpow2.f32 %v2278_v8  ;;  %v2248_v21 = vmul.f32 -1.442695, %v1244_v31  ;;  %v1275_v46 = vadd.f32 %v3394_v43, %v1151_v29  ;;  %v1759_v36 = vrot.slane %v3421_v25, %v3433_v53 }
 0x1a3   : > { %v2552_v7 = vpop.eup %2551  ;;  %2571 = vpow2.f32 %v2247_v12  ;;  %v1064_v11 = vpop.xlane.xlu1 %1063  ;;  %v3469_v50 = vsub.s32 %v1790_v2, %v3416_v39 }
 0x1a4   : > { %v2554_v47 = vpop.eup %2553  ;;  %v1246_v51 = vadd.f32 %v3394_v43, %v1064_v11  ;;  %2573 = vpow2.f32 %v2248_v21  ;;  %v2279_v56 = vmul.f32 -1.442695, %v1275_v46  ;;  %v1924_v0 = vrot.slane %v2552_v7, %v3425_v44 }
 0x1a5   : > { %v2556_v52 = vpop.eup %2555  ;;  %v1527_v54 = vadd.f32 1.0, %v2554_v47  ;;  %2575 = vrcp.f32 %v1528_v24  ;;  %v1061_v33 = vpop.xlane.xlu0 %1060  ;;  %v3464_v46 = vsub.s32 %v1783_v60, %v3416_v39  ;;  %v1797_v11 = vadd.s32 4294967240, %v3414_v32 }
 0x1a6   : > { %v2558_v57 = vpop.eup %2557  ;;  %v1497_v55 = vadd.f32 1.0, %v2556_v52  ;;  %v2250_v61 = vmul.f32 -1.442695, %v1246_v51  ;;  %v1245_v3 = vadd.f32 %v3394_v43, %v1061_v33 }
 0x1a7   : > { %v2560_v62 = vpop.eup %2559  ;;  %v1928_v19 = vrot.slane %v2558_v57, %v3433_v53  ;;  %2577 = vrcp.f32 %v1527_v54  ;;  %v1160_v5 = vpop.xlane.xlu1 %1159 }
 0x1a8   : > { %v2562_v37 = vpop.eup %2561  ;;  %2579 = vrcp.f32 %v1497_v55  ;;  %v1278_v15 = vadd.f32 %v3394_v43, %v1160_v5  ;;  %v2249_v22 = vmul.f32 -1.442695, %v1245_v3  ;;  %v1773_v1 = vrot.slane %v2560_v62, %v3440_v10 }
 0x1a9   : > { %v2564_v16 = vpop.eup %2563  ;;  %v1929_v18 = vsel %vm1760_vm1, %v1928_v19, %v1924_v0  ;;  %v1498_v20 = vadd.f32 1.0, %v2562_v37  ;;  %2581 = vpow2.f32 %v2279_v56  ;;  %v1157_v35 = vpop.xlane.xlu0 %1156 }
 0x1aa   : > { %v2566_v9 = vpop.eup %2565  ;;  %v1529_v30 = vadd.f32 1.0, %v2564_v16  ;;  %2583 = vpow2.f32 %v2250_v61  ;;  %v2282_v34 = vmul.f32 -1.442695, %v1278_v15  ;;  %v1277_v58 = vadd.f32 %v3394_v43, %v1157_v35 }
 0x1ab   : > { %v2568_v17 = vpop.eup %2567  ;;  %v1754_v45 = vrot.slane %v2566_v9, %v3425_v44  ;;  %2585 = vrcp.f32 %v1498_v20  ;;  %v1070_v59 = vpop.xlane.xlu1 %1069 }
 0x1ac   : > { %v2570_v63 = vpop.eup %2569  ;;  %v1766_v28 = vrot.slane %v2568_v17, %v3443_v13  ;;  %2587 = vrcp.f32 %v1529_v30  ;;  %v1248_v23 = vadd.f32 %v3394_v43, %v1070_v59  ;;  %v2281_v8 = vmul.f32 -1.442695, %v1277_v58 }
 0x1ad   : > { %v2572_v27 = vpop.eup %2571  ;;  %v1761_v6 = vsel %vm1760_vm1, %v1759_v36, %v1754_v45  ;;  %v1530_v49 = vadd.f32 1.0, %v2570_v63  ;;  %2589 = vpow2.f32 %v2249_v22  ;;  %v1067_v40 = vpop.xlane.xlu0 %1066  ;;  %v3481_v30 = vsub.s32 %v1797_v11, %v3416_v39 }
 0x1ae   : > { %v1768_v4 = vsel %vm1767_vm2, %v1766_v28, %v1761_v6  ;;  %v1499_v38 = vadd.f32 1.0, %v2572_v27  ;;  %2591 = vpow2.f32 %v2282_v34  ;;  %v2574_v31 = vpop.eup %2573  ;;  %v2252_v42 = vmul.f32 -1.442695, %v1248_v23 }
 0x1af   : > { %v1775_v41 = vsel %vm1774_vm3, %v1773_v1, %v1768_v4  ;;  %2593 = vrcp.f32 %v1530_v49  ;;  %v1247_v12 = vadd.f32 %v3394_v43, %v1067_v40  ;;  %v1166_v25 = vpop.xlane.xlu1 %1165  ;;  %v2576_v24 = vpop.eup %2575  ;;  %v1500_v21 = vadd.f32 1.0, %v2574_v31 }
 0x1b0   : > { %2595 = vrcp.f32 %v1499_v38  ;;  %v1280_v29 = vadd.f32 %v3394_v43, %v1166_v25  ;;  %v1938_v56 = vrot.slane %v2576_v24, %v3440_v10 }
 0x1b1   : > { %v2578_v7 = vpop.eup %2577  ;;  %2597 = vpow2.f32 %v2281_v8  ;;  %v2251_v47 = vmul.f32 -1.442695, %v1247_v12  ;;  %v1172_v52 = vpop.xlane.xlu0 %1171 }
 0x1b2   : > { %v2580_v14 = vpop.eup %2579  ;;  %v1933_v48 = vrot.slane %v2578_v7, %v3443_v13  ;;  %2599 = vrcp.f32 %v1500_v21  ;;  %v2284_v51 = vmul.f32 -1.442695, %v1280_v29  ;;  %v1282_v55 = vadd.f32 %v3394_v43, %v1172_v52 }
 0x1b3   : > { %v2582_v54 = vpop.eup %2581  ;;  %v1780_v57 = vrot.slane %v2580_v14, %v3448_v26  ;;  %2601 = vpow2.f32 %v2252_v42  ;;  %v1163_v32 = vpop.xlane.xlu1 %1162 }
 0x1b4   : > { %v2584_v60 = vpop.eup %2583  ;;  %v1934_v61 = vsel %vm1767_vm2, %v1933_v48, %v1929_v18  ;;  %v1531_v33 = vadd.f32 1.0, %v2582_v54  ;;  %2603 = vpow2.f32 %v2251_v47  ;;  %v1279_v62 = vadd.f32 %v3394_v43, %v1163_v32 }
 0x1b5   : > { %v2586_v0 = vpop.eup %2585  ;;  %v1782_v19 = vsel %vm1781_vm4, %v1780_v57, %v1775_v41  ;;  %v1939_v3 = vsel %vm1774_vm3, %v1938_v56, %v1934_v61  ;;  %v1502_v5 = vadd.f32 1.0, %v2584_v60  ;;  %2605 = vpow2.f32 %v2284_v51  ;;  %v1073_v22 = vpop.xlane.xlu0 %1072 }
 0x1b6   : > { %v2588_v37 = vpop.eup %2587  ;;  %v1787_v15 = vrot.slane %v2586_v0, %v3464_v46  ;;  %2607 = vrcp.f32 %v1531_v33  ;;  %v2286_v16 = vmul.f32 -1.442695, %v1282_v55  ;;  %v2283_v20 = vmul.f32 -1.442695, %v1279_v62 }
 0x1b7   : > { %v2590_v9 = vpop.eup %2589  ;;  %v1943_v18 = vrot.slane %v2588_v37, %v3448_v26  ;;  %2609 = vrcp.f32 %v1502_v5  ;;  %v1249_v34 = vadd.f32 %v3394_v43, %v1073_v22  ;;  %v1076_v35 = vpop.xlane.xlu1 %1075 }
 0x1b8   : > { %v2592_v17 = vpop.eup %2591  ;;  %v1789_v36 = vsel %vm1788_vm5, %v1787_v15, %v1782_v19  ;;  %v1501_v45 = vadd.f32 1.0, %v2590_v9  ;;  %2611 = vpow2.f32 %v2286_v16  ;;  %v1250_v58 = vadd.f32 %v3394_v43, %v1076_v35 }
 0x1b9   : > { %v2594_v59 = vpop.eup %2593  ;;  %v1944_v63 = vsel %vm1781_vm4, %v1943_v18, %v1939_v3  ;;  %v1534_v1 = vadd.f32 1.0, %v2592_v17  ;;  %2613 = vpow2.f32 %v2283_v20  ;;  %v2253_v28 = vmul.f32 -1.442695, %v1249_v34  ;;  %v1169_v6 = vpop.xlane.xlu0 %1168 }
 0x1ba   : > { %v2596_v23 = vpop.eup %2595  ;;  %v1948_v39 = vrot.slane %v2594_v59, %v3464_v46  ;;  %2615 = vrcp.f32 %v1501_v45  ;;  %v2254_v27 = vmul.f32 -1.442695, %v1250_v58  ;;  %v1281_v4 = vadd.f32 %v3394_v43, %v1169_v6 }
 0x1bb   : > { %v2598_v49 = vpop.eup %2597  ;;  %v1794_v8 = vrot.slane %v2596_v23, %v3469_v50  ;;  %2617 = vrcp.f32 %v1534_v1  ;;  %v1082_v2 = vpop.xlane.xlu1 %1081 }
 0x1bc   : > { %v2600_v38 = vpop.eup %2599  ;;  %v1533_v40 = vadd.f32 1.0, %v2598_v49  ;;  %2619 = vpow2.f32 %v2253_v28  ;;  %v1252_v31 = vadd.f32 %v3394_v43, %v1082_v2  ;;  %v1949_v41 = vsel %vm1788_vm5, %v1948_v39, %v1944_v63 }
 0x1bd   : > { %v2602_v42 = vpop.eup %2601  ;;  %v1796_v12 = vsel %vm1795_vm6, %v1794_v8, %v1789_v36  ;;  %v1801_v25 = vrot.slane %v2600_v38, %v3481_v30  ;;  %2621 = vpow2.f32 %v2254_v27  ;;  %v2285_v24 = vmul.f32 -1.442695, %v1281_v4  ;;  %v1079_v11 = vpop.xlane.xlu0 %1078 }
 0x1be   : > { %v2604_v21 = vpop.eup %2603  ;;  %2623 = vrcp.f32 %v1533_v40  ;;  %v1504_v29 = vadd.f32 1.0, %v2602_v42  ;;  %v2256_v7 = vmul.f32 -1.442695, %v1252_v31  ;;  %v1251_v51 = vadd.f32 %v3394_v43, %v1079_v11 }
 0x1bf   : > { %v2606_v47 = vpop.eup %2605  ;;  %v3495_v14 = vsel %vm1802_vm7, %v1801_v25, %v1796_v12  ;;  %v1503_v48 = vadd.f32 1.0, %v2604_v21  ;;  %2625 = vpow2.f32 %v2285_v24  ;;  %v1088_v52 = vpop.xlane.xlu1 %1087 }
 0x1c0   : > { %v2608_v54 = vpop.eup %2607  ;;  %2627 = vrcp.f32 %v1504_v29  ;;  %v1536_v56 = vadd.f32 1.0, %v2606_v47  ;;  %v1254_v57 = vadd.f32 %v3394_v43, %v1088_v52  ;;  %v2255_v60 = vmul.f32 -1.442695, %v1251_v51 }
 0x1c1   : > { %v2610_v55 = vpop.eup %2609  ;;  %v1953_v32 = vrot.slane %v2608_v54, %v3469_v50  ;;  %2629 = vrcp.f32 %v1503_v48  ;;  %v1085_v62 = vpop.xlane.xlu0 %1084 }
 0x1c2   : > { %v2612_v61 = vpop.eup %2611  ;;  %2631 = vrcp.f32 %v1536_v56  ;;  %v2258_v33 = vmul.f32 -1.442695, %v1254_v57  ;;  %v1253_v3 = vadd.f32 %v3394_v43, %v1085_v62  ;;  %v1811_v2 = vrot.slane %v2610_v55, %v3433_v53 }
 0x1c3   : > { %v2614_v0 = vpop.eup %2613  ;;  %v1538_v19 = vadd.f32 1.0, %v2612_v61  ;;  %2633 = vpow2.f32 %v2256_v7  ;;  %v1184_v5 = vpop.xlane.xlu1 %1183  ;;  %v3502_v37 = vsel %vm1795_vm6, %v1953_v32, %v1949_v41 }
 0x1c4   : > { %v2616_v15 = vpop.eup %2615  ;;  %v1535_v16 = vadd.f32 1.0, %v2614_v0  ;;  %2635 = vpow2.f32 %v2255_v60  ;;  %v1286_v20 = vadd.f32 %v3394_v43, %v1184_v5  ;;  %v2257_v9 = vmul.f32 -1.442695, %v1253_v3 }
 0x1c5   : > { %v2618_v22 = vpop.eup %2617  ;;  %2637 = vrcp.f32 %v1538_v19  ;;  %v1181_v34 = vpop.xlane.xlu0 %1180  ;;  %v1807_v23 = vrot.slane %v2616_v15, %v3425_v44 }
 0x1c6   : > { %v2620_v18 = vpop.eup %2619  ;;  %2639 = vrcp.f32 %v1535_v16  ;;  %v2290_v36 = vmul.f32 -1.442695, %v1286_v20  ;;  %v1285_v45 = vadd.f32 %v3394_v43, %v1181_v34  ;;  %v1967_v57 = vrot.slane %v2618_v22, %v3433_v53 }
 0x1c7   : > { %v2622_v35 = vpop.eup %2621  ;;  %v1505_v17 = vadd.f32 1.0, %v2620_v18  ;;  %2641 = vpow2.f32 %v2258_v33  ;;  %v1094_v58 = vpop.xlane.xlu1 %1093  ;;  %v1812_v25 = vsel %vm1760_vm1, %v1811_v2, %v1807_v23 }
 0x1c8   : > { %v2624_v59 = vpop.eup %2623  ;;  %v1506_v63 = vadd.f32 1.0, %v2622_v35  ;;  %2643 = vpow2.f32 %v2257_v9  ;;  %v1256_v1 = vadd.f32 %v3394_v43, %v1094_v58  ;;  %v2289_v39 = vmul.f32 -1.442695, %v1285_v45 }
 0x1c9   : > { %v2626_v28 = vpop.eup %2625  ;;  %2645 = vrcp.f32 %v1505_v17  ;;  %v1091_v8 = vpop.xlane.xlu0 %1090  ;;  %v1963_v29 = vrot.slane %v2624_v59, %v3425_v44 }
 0x1ca   : > { %v2628_v27 = vpop.eup %2627  ;;  %2647 = vrcp.f32 %v1506_v63  ;;  %v1537_v6 = vadd.f32 1.0, %v2626_v28  ;;  %v2260_v49 = vmul.f32 -1.442695, %v1256_v1  ;;  %v1255_v38 = vadd.f32 %v3394_v43, %v1091_v8 }
 0x1cb   : > { %v2630_v4 = vpop.eup %2629  ;;  %2649 = vpow2.f32 %v2290_v36  ;;  %v1190_v40 = vpop.xlane.xlu1 %1189  ;;  %v1968_v0 = vsel %vm1760_vm1, %v1967_v57, %v1963_v29  ;;  %v1821_v19 = vrot.slane %v2628_v27, %v3440_v10 }
 0x1cc   : > { %v3510_v31 = vpop.eup %2631  ;;  %v1816_v41 = vrot.slane %v2630_v4, %v3443_v13  ;;  %2651 = vrcp.f32 %v1537_v6  ;;  %v1288_v42 = vadd.f32 %v3394_v43, %v1190_v40  ;;  %v2259_v24 = vmul.f32 -1.442695, %v1255_v38 }
 0x1cd   : > { %v2634_v12 = vpop.eup %2633  ;;  %2653 = vpow2.f32 %v2289_v39  ;;  %v1187_v47 = vpop.xlane.xlu0 %1186  ;;  %v1977_v16 = vrot.slane %v3510_v31, %v3440_v10 }
 0x1ce   : > { %v2636_v21 = vpop.eup %2635  ;;  %v1817_v7 = vsel %vm1767_vm2, %v1816_v41, %v1812_v25  ;;  %v1508_v11 = vadd.f32 1.0, %v2634_v12  ;;  %2655 = vpow2.f32 %v2260_v49  ;;  %v1287_v52 = vadd.f32 %v3394_v43, %v1187_v47 }
 0x1cf   : > { %v2638_v48 = vpop.eup %2637  ;;  %v1507_v51 = vadd.f32 1.0, %v2636_v21  ;;  %2657 = vpow2.f32 %v2259_v24  ;;  %v1097_v54 = vpop.xlane.xlu1 %1096  ;;  %v2292_v55 = vmul.f32 -1.442695, %v1288_v42  ;;  %v1822_v58 = vsel %vm1774_vm3, %v1821_v19, %v1817_v7 }
 0x1d0   : > { %v2640_v56 = vpop.eup %2639  ;;  %2659 = vrcp.f32 %v1508_v11  ;;  %v1257_v32 = vadd.f32 %v3394_v43, %v1097_v54  ;;  %v2291_v33 = vmul.f32 -1.442695, %v1287_v52  ;;  %v1987_v4 = vrot.slane %v2638_v48, %v3464_v46 }
 0x1d1   : > { %v2642_v60 = vpop.eup %2641  ;;  %v1972_v61 = vrot.slane %v2640_v56, %v3443_v13  ;;  %2661 = vrcp.f32 %v1507_v51  ;;  %v1100_v5 = vpop.xlane.xlu0 %1099 }
 0x1d2   : > { %v2644_v62 = vpop.eup %2643  ;;  %v2261_v3 = vmul.f32 -1.442695, %v1257_v32  ;;  %2663 = vpow2.f32 %v2291_v33  ;;  %v1258_v22 = vadd.f32 %v3394_v43, %v1100_v5  ;;  %v1510_v35 = vadd.f32 1.0, %v2642_v60 }
 0x1d3   : > { %v2646_v15 = vpop.eup %2645  ;;  %v1509_v20 = vadd.f32 1.0, %v2644_v62  ;;  %v1106_v9 = vpop.xlane.xlu1 %1105  ;;  %2665 = vpow2.f32 %v2292_v55  ;;  %v1973_v45 = vsel %vm1767_vm2, %v1972_v61, %v1968_v0 }
 0x1d4   : > { %v2648_v18 = vpop.eup %2647  ;;  %v1826_v34 = vrot.slane %v2646_v15, %v3448_v26  ;;  %v1260_v17 = vadd.f32 %v3394_v43, %v1106_v9  ;;  %v2262_v59 = vmul.f32 -1.442695, %v1258_v22  ;;  %v1978_v38 = vsel %vm1774_vm3, %v1977_v16, %v1973_v45 }
 0x1d5   : > { %v2650_v36 = vpop.eup %2649  ;;  %2667 = vrcp.f32 %v1509_v20  ;;  %v1193_v39 = vpop.xlane.xlu0 %1192  ;;  %v1831_v31 = vrot.slane %v2648_v18, %v3464_v46 }
 0x1d6   : > { %v2652_v63 = vpop.eup %2651  ;;  %v1827_v1 = vsel %vm1781_vm4, %v1826_v34, %v1822_v58  ;;  %v1542_v28 = vadd.f32 1.0, %v2650_v36  ;;  %2669 = vpow2.f32 %v2261_v3  ;;  %v2264_v23 = vmul.f32 -1.442695, %v1260_v17 }
 0x1d7   : > { %v2654_v27 = vpop.eup %2653  ;;  %v1982_v6 = vrot.slane %v2652_v63, %v3448_v26  ;;  %2671 = vpow2.f32 %v2262_v59  ;;  %v1289_v49 = vadd.f32 %v3394_v43, %v1193_v39  ;;  %v1832_v51 = vsel %vm1788_vm5, %v1831_v31, %v1827_v1  ;;  %v1109_v3 = vpop.xlane.xlu1 %1108 }
 0x1d8   : > { %v2656_v8 = vpop.eup %2655  ;;  %2673 = vrcp.f32 %v1510_v35  ;;  %v1541_v2 = vadd.f32 1.0, %v2654_v27 }
 0x1d9   : > { %v2658_v40 = vpop.eup %2657  ;;  %2675 = vrcp.f32 %v1542_v28  ;;  %v2293_v41 = vmul.f32 -1.442695, %v1289_v49  ;;  %v1983_v42 = vsel %vm1781_vm4, %v1982_v6, %v1978_v38  ;;  %v1103_v24 = vpop.xlane.xlu0 %1102  ;;  %v1512_v7 = vadd.f32 1.0, %v2656_v8 }
 0x1da   : > { %v2660_v12 = vpop.eup %2659  ;;  %v1511_v25 = vadd.f32 1.0, %v2658_v40  ;;  %2677 = vpow2.f32 %v2264_v23  ;;  %v3538_v21 = vsel %vm1788_vm5, %v1987_v4, %v1983_v42  ;;  %v1259_v11 = vadd.f32 %v3394_v43, %v1103_v24 }
 0x1db   : > { %v2662_v29 = vpop.eup %2661  ;;  %2679 = vrcp.f32 %v1541_v2  ;;  %v1841_v52 = vrot.slane %v2660_v12, %v3481_v30  ;;  %v1205_v58 = vpop.xlane.xlu1 %1204  ;;  %v1261_v38 = vadd.f32 %v3394_v43, %v1109_v3 }
 0x1dc   : > { %v1836_v47 = vrot.slane %v2662_v29, %v3469_v50  ;;  %2681 = vrcp.f32 %v1511_v25  ;;  %v2664_v48 = vpop.eup %2663  ;;  %v2263_v54 = vmul.f32 -1.442695, %v1259_v11 }
 0x1dd   : > { %2683 = vpow2.f32 %v2293_v41  ;;  %v2666_v56 = vpop.eup %2665  ;;  %v1543_v55 = vadd.f32 1.0, %v2664_v48  ;;  %v1112_v32 = vpop.xlane.xlu0 %1111  ;;  %v2265_v48 = vmul.f32 -1.442695, %v1261_v38 }
 0x1de   : > { %v1837_v57 = vsel %vm1795_vm6, %v1836_v47, %v1832_v51  ;;  %2685 = vrcp.f32 %v1512_v7  ;;  %v1544_v22 = vadd.f32 1.0, %v2666_v56  ;;  %v1293_v51 = vadd.f32 %v3394_v43, %v1205_v58 }
 0x1df   : > { %v2668_v60 = vpop.eup %2667  ;;  %v1842_v61 = vsel %vm1802_vm7, %v1841_v52, %v1837_v57  ;;  %2687 = vrcp.f32 %v1543_v55  ;;  %v1124_v12 = vpop.xlane.xlu1 %1123  ;;  %v1262_v56 = vadd.f32 %v3394_v43, %v1112_v32 }
 0x1e0   : > { %v2670_v33 = vpop.eup %2669  ;;  %v3547_v62 = vsel %vm2077_vm8, %v1842_v61, %v3495_v14  ;;  %2689 = vpow2.f32 %v2263_v54  ;;  %v1846_v18 = vrot.slane %v2668_v60, %v3425_v44 }
 0x1e1   : > { %v2672_v0 = vpop.eup %2671  ;;  %v1513_v19 = vadd.f32 1.0, %v2670_v33  ;;  %v1208_v16 = vpop.xlane.xlu0 %1207  ;;  %v2297_v33 = vmul.f32 -1.442695, %v1293_v51 }
 0x1e2   : > { %v2674_v5 = vpop.eup %2673  ;;  %v1514_v15 = vadd.f32 1.0, %v2672_v0  ;;  %v1266_v0 = vadd.f32 %v3394_v43, %v1124_v12  ;;  %v1294_v3 = vadd.f32 %v3394_v43, %v1208_v16 }
 0x1e3   : > { %v2676_v20 = vpop.eup %2675  ;;  %2691 = vrcp.f32 %v1513_v19  ;;  %v1850_v17 = vrot.slane %v2674_v5, %v3433_v53  ;;  %v1121_v55 = vpop.xlane.xlu1 %1120  ;;  %v2266_v5 = vmul.f32 -1.442695, %v1262_v56 }
 0x1e4   : > { %v2678_v9 = vpop.eup %2677  ;;  %2693 = vrcp.f32 %v1514_v15  ;;  %v2006_v6 = vrot.slane %v2676_v20, %v3433_v53  ;;  %v1265_v58 = vadd.f32 %v3394_v43, %v1121_v55 }
 0x1e5   : > { %v2680_v34 = vpop.eup %2679  ;;  %v3551_v14 = vpop.xlane.xlu0 %1117  ;;  %2695 = vrcp.f32 %v1544_v22  ;;  %v1851_v59 = vsel %vm1760_vm1, %v1850_v17, %v1846_v18  ;;  %v1516_v39 = vadd.f32 1.0, %v2678_v9  ;;  %v2270_v18 = vmul.f32 -1.442695, %v1266_v0 }
 0x1e6   : > { %v2682_v35 = vpop.eup %2681  ;;  %v2002_v63 = vrot.slane %v2680_v34, %v3425_v44 }
 0x1e7   : > { %v2684_v36 = vpop.eup %2683  ;;  %v1855_v45 = vrot.slane %v2682_v35, %v3443_v13  ;;  %v2298_v35 = vmul.f32 -1.442695, %v1294_v3  ;;  %v1214_v17 = vpop.xlane.xlu1 %1213 }
 0x1e8   : > { %v1545_v1 = vadd.f32 1.0, %v2684_v36  ;;  %v2686_v28 = vpop.eup %2685  ;;  %v2007_v2 = vsel %vm1760_vm1, %v2006_v6, %v2002_v63  ;;  %v2269_v6 = vmul.f32 -1.442695, %v1265_v58 }
 0x1e9   : > { %v1856_v23 = vsel %vm1767_vm2, %v1855_v45, %v1851_v59  ;;  %v2688_v27 = vpop.eup %2687  ;;  %v1115_v49 = vpop.xlane.xlu0 %1114  ;;  %v1860_v41 = vrot.slane %v2686_v28, %v3440_v10  ;;  %v1264_v28 = vadd.f32 %v3394_v43, %v3551_v14 }
 0x1ea   : > { %2697 = vrcp.f32 %v1545_v1  ;;  %v2690_v8 = vpop.eup %2689  ;;  %v2011_v4 = vrot.slane %v2688_v27, %v3443_v13 }
 0x1eb   : > { %v1515_v40 = vadd.f32 1.0, %v2690_v8  ;;  %2699 = vrcp.f32 %v1516_v39  ;;  %v1861_v7 = vsel %vm1774_vm3, %v1860_v41, %v1856_v23  ;;  %v1296_v39 = vadd.f32 %v3394_v43, %v1214_v17  ;;  %v1226_v27 = vpop.xlane.xlu1 %1225 }
 0x1ec   : > { %v2012_v42 = vsel %vm1767_vm2, %v2011_v4, %v2007_v2  ;;  %v1263_v8 = vadd.f32 %v3394_v43, %v1115_v49  ;;  %v2268_v38 = vmul.f32 -1.442695, %v1264_v28 }
 0x1ed   : > { %v2692_v31 = vpop.eup %2691  ;;  %2701 = vrcp.f32 %v1515_v40  ;;  %v1211_v29 = vpop.xlane.xlu0 %1210  ;;  %v1300_v40 = vadd.f32 %v3394_v43, %v1226_v27  ;;  %v2300_v41 = vmul.f32 -1.442695, %v1296_v39 }
 0x1ee   : > { %v2694_v25 = vpop.eup %2693  ;;  %v1865_v24 = vrot.slane %v2692_v31, %v3448_v26  ;;  %2703 = vpow2.f32 %v2265_v48  ;;  %v1295_v12 = vadd.f32 %v3394_v43, %v1211_v29 }
 0x1ef   : > { %v1870_v11 = vrot.slane %v2694_v25, %v3464_v46  ;;  %v2696_v52 = vpop.eup %2695  ;;  %2705 = vpow2.f32 %v2297_v33 }
 0x1f0   : > { %v1866_v47 = vsel %vm1781_vm4, %v1865_v24, %v1861_v7  ;;  %v2016_v61 = vrot.slane %v2696_v52, %v3440_v10  ;;  %2707 = vpow2.f32 %v2266_v5  ;;  %v2304_v24 = vmul.f32 -1.442695, %v1300_v40 }
 0x1f1   : > { %v1871_v54 = vsel %vm1788_vm5, %v1870_v11, %v1866_v47  ;;  %v1154_v57 = vpop.xlane.xlu0 %1153  ;;  %2709 = vpow2.f32 %v2270_v18  ;;  %v2299_v48 = vmul.f32 -1.442695, %v1295_v12 }
 0x1f2   : > { %v2017_v20 = vsel %vm1774_vm3, %v2016_v61, %v2012_v42  ;;  %2711 = vpow2.f32 %v2298_v35  ;;  %v2267_v42 = vmul.f32 -1.442695, %v1263_v8  ;;  %v1276_v47 = vadd.f32 %v3394_v43, %v1154_v57 }
 0x1f3   : > { %2713 = vpow2.f32 %v2269_v6 }
 0x1f4   : > { %v2698_v60 = vpop.eup %2697 }
 0x1f5   : > { %v2021_v19 = vrot.slane %v2698_v60, %v3448_v26  ;;  %v1175_v15 = vpop.xlane.xlu0 %1174  ;;  %v2700_v22 = vpop.eup %2699  ;;  %v2280_v60 = vmul.f32 -1.442695, %v1276_v47 }
 0x1f6   : > { %v1880_v36 = vrot.slane %v2700_v22, %v3481_v30  ;;  %v1283_v51 = vadd.f32 %v3394_v43, %v1175_v15 }
 0x1f7   : > { %v3576_v32 = vsel %vm1781_vm4, %v2021_v19, %v2017_v20  ;;  %v2702_v9 = vpop.eup %2701 }
 0x1f8   : > { %v1875_v34 = vrot.slane %v2702_v9, %v3469_v50  ;;  %v2704_v1 = vpop.eup %2703  ;;  %v2287_v61 = vmul.f32 -1.442695, %v1283_v51 }
 0x1f9   : > { %v1196_v45 = vpop.xlane.xlu0 %1195  ;;  %v1517_v4 = vadd.f32 1.0, %v2704_v1  ;;  %v2706_v2 = vpop.eup %2705 }
 0x1fa   : > { %v1876_v16 = vsel %vm1795_vm6, %v1875_v34, %v1871_v54  ;;  %v1549_v14 = vadd.f32 1.0, %v2706_v2  ;;  %v1290_v54 = vadd.f32 %v3394_v43, %v1196_v45 }
 0x1fb   : > { %v1881_v59 = vsel %vm1802_vm7, %v1880_v36, %v1876_v16  ;;  %2715 = vrcp.f32 %v1517_v4 }
 0x1fc   : > { %v3584_v63 = vsel %vm2079_vm9, %v1881_v59, %v3547_v62  ;;  %v2708_v62 = vpop.eup %2707  ;;  %2717 = vpow2.f32 %v2268_v38  ;;  %v2294_v57 = vmul.f32 -1.442695, %v1290_v54 }
 0x1fd   : > { %v1178_v23 = vpop.xlane.xlu0 %1177  ;;  %v2710_v25 = vpop.eup %2709  ;;  %v1518_v49 = vadd.f32 1.0, %v2708_v62  ;;  %2719 = vpow2.f32 %v2300_v41 }
 0x1fe   : > { %v2712_v11 = vpop.eup %2711  ;;  %2721 = vpow2.f32 %v2267_v42  ;;  %v1522_v52 = vadd.f32 1.0, %v2710_v25  ;;  %v1284_v56 = vadd.f32 %v3394_v43, %v1178_v23 }
 0x1ff   : > { %2723 = vrcp.f32 %v1549_v14  ;;  %v1550_v29 = vadd.f32 1.0, %v2712_v11  ;;  %v2714_v19 = vpop.eup %2713 }
 0x200   : > { %2725 = vpow2.f32 %v2304_v24  ;;  %v2288_v3 = vmul.f32 -1.442695, %v1284_v56  ;;  %v1521_v45 = vadd.f32 1.0, %v2714_v19 }
 0x201   : > { %v1199_v31 = vpop.xlane.xlu0 %1198  ;;  %2727 = vrcp.f32 %v1518_v49 }
 0x202   : > { %2729 = vpow2.f32 %v2299_v48  ;;  %v1291_v33 = vadd.f32 %v3394_v43, %v1199_v31 }
 0x203   : > { %2731 = vrcp.f32 %v1522_v52 }
 0x204   : > { %2733 = vrcp.f32 %v1550_v29  ;;  %v2295_v9 = vmul.f32 -1.442695, %v1291_v33 }
 0x205   : > { %v1220_v7 = vpop.xlane.xlu0 %1219  ;;  %v3598_v15 = vpop.eup %2715  ;;  %2735 = vpow2.f32 %v2280_v60 }
 0x206   : > { %v2718_v22 = vpop.eup %2717  ;;  %2737 = vpow2.f32 %v2287_v61  ;;  %v1298_v18 = vadd.f32 %v3394_v43, %v1220_v7 }
 0x207   : > { %v2720_v34 = vpop.eup %2719  ;;  %2739 = vpow2.f32 %v2294_v57  ;;  %v1520_v8 = vadd.f32 1.0, %v2718_v22 }
 0x208   : > { %v2722_v36 = vpop.eup %2721  ;;  %2741 = vpow2.f32 %v2288_v3  ;;  %v2302_v28 = vmul.f32 -1.442695, %v1298_v18  ;;  %v1552_v31 = vadd.f32 1.0, %v2720_v34 }
 0x209   : > { %v1202_v55 = vpop.xlane.xlu0 %1201  ;;  %v3602_v58 = vpop.eup %2723  ;;  %v1519_v39 = vadd.f32 1.0, %v2722_v36 }
 0x20a   : > { %v1292_v0 = vadd.f32 %v3394_v43, %v1202_v55  ;;  %v2726_v1 = vpop.eup %2725 }
 0x20b   : > { %v3605_v23 = vpop.eup %2727  ;;  %v1556_v62 = vadd.f32 1.0, %v2726_v1 }
 0x20c   : > { %v2296_v35 = vmul.f32 -1.442695, %v1292_v0  ;;  %v2730_v6 = vpop.eup %2729 }
 0x20d   : > { %v1217_v5 = vpop.xlane.xlu0 %1216  ;;  %v3607_v2 = vpop.eup %2731  ;;  %v1551_v14 = vadd.f32 1.0, %v2730_v6 }
 0x20e   : > { %v1297_v20 = vadd.f32 %v3394_v43, %v1217_v5  ;;  %v3610_v40 = vpop.eup %2733 }
 0x20f   : > { %v2736_v41 = vpop.eup %2735  ;;  %v2045_v6 = vrot.slane %v3610_v40, %v3433_v53 }
 0x210   : > { %v2301_v17 = vmul.f32 -1.442695, %v1297_v20  ;;  %v2738_v12 = vpop.eup %2737  ;;  %v1532_v49 = vadd.f32 1.0, %v2736_v41  ;;  %v1889_v20 = vrot.slane %v3605_v23, %v3433_v53 }
 0x211   : > { %v1130_v16 = vpop.xlane.xlu0 %1129  ;;  %v2740_v24 = vpop.eup %2739  ;;  %v1539_v48 = vadd.f32 1.0, %v2738_v12 }
 0x212   : > { %2743 = vpow2.f32 %v2301_v17  ;;  %v1268_v59 = vadd.f32 %v3394_v43, %v1130_v16  ;;  %v2742_v11 = vpop.eup %2741  ;;  %v1546_v54 = vadd.f32 1.0, %v2740_v24  ;;  %v1885_v17 = vrot.slane %v3598_v15, %v3425_v44 }
 0x213   : > { %2745 = vpow2.f32 %v2295_v9  ;;  %v1540_v56 = vadd.f32 1.0, %v2742_v11 }
 0x214   : > { %2747 = vpow2.f32 %v2296_v35  ;;  %v2272_v27 = vmul.f32 -1.442695, %v1268_v59  ;;  %v1890_v16 = vsel %vm1760_vm1, %v1889_v20, %v1885_v17 }
 0x215   : > { %2749 = vrcp.f32 %v1521_v45  ;;  %v1127_v4 = vpop.xlane.xlu0 %1126 }
 0x216   : > { %2751 = vpow2.f32 %v2272_v27  ;;  %v1267_v38 = vadd.f32 %v3394_v43, %v1127_v4 }
 0x217   : > { %2753 = vpow2.f32 %v2302_v28 }
 0x218   : > { %2755 = vrcp.f32 %v1519_v39  ;;  %v2271_v42 = vmul.f32 -1.442695, %v1267_v38 }
 0x219   : > { %2757 = vrcp.f32 %v1520_v8  ;;  %v1223_v25 = vpop.xlane.xlu0 %1222 }
 0x21a   : > { %2759 = vpow2.f32 %v2271_v42  ;;  %v1299_v7 = vadd.f32 %v3394_v43, %v1223_v25 }
 0x21b   : > { %2761 = vrcp.f32 %v1552_v31  ;;  %v2041_v31 = vrot.slane %v3602_v58, %v3425_v44 }
 0x21c   : > { %v2744_v47 = vpop.eup %2743  ;;  %2763 = vrcp.f32 %v1556_v62  ;;  %v2303_v51 = vmul.f32 -1.442695, %v1299_v7 }
 0x21d   : > { %v2746_v52 = vpop.eup %2745  ;;  %2765 = vrcp.f32 %v1551_v14  ;;  %v1553_v60 = vadd.f32 1.0, %v2744_v47  ;;  %v2046_v12 = vsel %vm1760_vm1, %v2045_v6, %v2041_v31  ;;  %v1909_v14 = vrot.slane %v3607_v2, %v3464_v46 }
 0x21e   : > { %v2748_v29 = vpop.eup %2747  ;;  %2767 = vpow2.f32 %v2303_v51  ;;  %v1547_v33 = vadd.f32 1.0, %v2746_v52 }
 0x21f   : > { %v2750_v55 = vpop.eup %2749  ;;  %2769 = vrcp.f32 %v1532_v49  ;;  %v1548_v57 = vadd.f32 1.0, %v2748_v29 }
 0x220   : > { %v2752_v61 = vpop.eup %2751  ;;  %2771 = vrcp.f32 %v1539_v48  ;;  %v1904_v41 = vrot.slane %v2750_v55, %v3448_v26 }
 0x221   : > { %v2754_v43 = vpop.eup %2753  ;;  %2773 = vrcp.f32 %v1546_v54  ;;  %v1524_v19 = vadd.f32 1.0, %v2752_v61 }
 0x222   : > { %v2756_v0 = vpop.eup %2755  ;;  %2775 = vrcp.f32 %v1540_v56  ;;  %v1554_v22 = vadd.f32 1.0, %v2754_v43 }
 0x223   : > { %v2758_v3 = vpop.eup %2757  ;;  %2777 = vrcp.f32 %v1553_v60  ;;  %v1894_v18 = vrot.slane %v2756_v0, %v3443_v13 }
 0x224   : > { %v2760_v5 = vpop.eup %2759  ;;  %2779 = vrcp.f32 %v1547_v33  ;;  %v1899_v39 = vrot.slane %v2758_v3, %v3440_v10 }
 0x225   : > { %v2762_v9 = vpop.eup %2761  ;;  %2781 = vrcp.f32 %v1548_v57  ;;  %v1523_v34 = vadd.f32 1.0, %v2760_v5  ;;  %v1895_v1 = vsel %vm1767_vm2, %v1894_v18, %v1890_v16 }
 0x226   : > { %v3616_v35 = vpop.eup %2763  ;;  %2783 = vrcp.f32 %v1524_v19  ;;  %v1900_v8 = vsel %vm1774_vm3, %v1899_v39, %v1895_v1  ;;  %v2055_v25 = vrot.slane %v2762_v9, %v3440_v10 }
 0x227   : > { %v2766_v36 = vpop.eup %2765  ;;  %2785 = vrcp.f32 %v1523_v34  ;;  %v1905_v53 = vsel %vm1781_vm4, %v1904_v41, %v1900_v8  ;;  %v2075_v33 = vrot.slane %v3616_v35, %v3481_v30 }
 0x228   : > { %v2768_v45 = vpop.eup %2767  ;;  %2787 = vrcp.f32 %v1554_v22  ;;  %v2050_v4 = vrot.slane %v2766_v36, %v3443_v13  ;;  %v1910_v49 = vsel %vm1788_vm5, %v1909_v14, %v1905_v53 }
 0x229   : > { %v2770_v59 = vpop.eup %2769  ;;  %v1555_v28 = vadd.f32 1.0, %v2768_v45 }
 0x22a   : > { %v2772_v23 = vpop.eup %2771  ;;  %v2051_v44 = vsel %vm1767_vm2, %v2050_v4, %v2046_v12  ;;  %v1958_v24 = vrot.slane %v2770_v59, %v3481_v30 }
 0x22b   : > { %v2774_v27 = vpop.eup %2773  ;;  %2789 = vrcp.f32 %v1555_v28  ;;  %v1992_v11 = vrot.slane %v2772_v23, %v3469_v50  ;;  %v2056_v51 = vsel %vm1774_vm3, %v2055_v25, %v2051_v44 }
 0x22c   : > { %v2776_v15 = vpop.eup %2775  ;;  %v2026_v2 = vrot.slane %v2774_v27, %v3464_v46  ;;  %v1959_v61 = vsel %vm1802_vm7, %v1958_v24, %v3502_v37 }
 0x22d   : > { %v2778_v38 = vpop.eup %2777  ;;  %v1997_v47 = vrot.slane %v2776_v15, %v3481_v30  ;;  %v1993_v43 = vsel %vm1795_vm6, %v1992_v11, %v3538_v21 }
 0x22e   : > { %v2780_v62 = vpop.eup %2779  ;;  %v2060_v13 = vrot.slane %v2778_v38, %v3448_v26  ;;  %v2027_v57 = vsel %vm1788_vm5, %v2026_v2, %v3576_v32 }
 0x22f   : > { %v2782_v42 = vpop.eup %2781  ;;  %v2031_v48 = vrot.slane %v2780_v62, %v3469_v50 }
 0x230   : > { %v2784_v40 = vpop.eup %2783  ;;  %v2036_v54 = vrot.slane %v2782_v42, %v3481_v30  ;;  %v2061_v29 = vsel %vm1781_vm4, %v2060_v13, %v2056_v51 }
 0x231   : > { %v2786_v58 = vpop.eup %2785  ;;  %v1919_v10 = vrot.slane %v2784_v40, %v3481_v30  ;;  %v2032_v37 = vsel %vm1795_vm6, %v2031_v48, %v2027_v57 }
 0x232   : > { %v2788_v7 = vpop.eup %2787  ;;  %v1914_v26 = vrot.slane %v2786_v58, %v3469_v50  ;;  %v2037_v32 = vsel %vm1802_vm7, %v2036_v54, %v2032_v37 }
 0x233   : > { %v2065_v55 = vrot.slane %v2788_v7, %v3464_v46  ;;  %v1998_v46 = vsel %vm1802_vm7, %v1997_v47, %v1993_v43 }
 0x234   : > { %v1915_v52 = vsel %vm1795_vm6, %v1914_v26, %v1910_v49 }
 0x235   : > { %v2790_v56 = vpop.eup %2789  ;;  %v1920_v60 = vsel %vm1802_vm7, %v1919_v10, %v1915_v52  ;;  %v2066_v30 = vsel %vm1788_vm5, %v2065_v55, %v2061_v29 }
 0x236   : > { %v2070_v0 = vrot.slane %v2790_v56, %v3469_v50  ;;  %v2082_v19 = vsel %vm2081_vm10, %v1920_v60, %v3584_v63 }
 0x237   : > { %v2084_v21 = vsel %vm2083_vm11, %v1959_v61, %v2082_v19 }
 0x238   : > { %v2071_v50 = vsel %vm1795_vm6, %v2070_v0, %v2066_v30  ;;  %v2086_v3 = vsel %vm2085_vm12, %v1998_v46, %v2084_v21 }
 0x239   : > { %v2076_v63 = vsel %vm1802_vm7, %v2075_v33, %v2071_v50  ;;  %v2088_v5 = vsel %vm2087_vm13, %v2037_v32, %v2086_v3 }
 0x23a   : > { %v2090_v20 = vsel %vm2089_vm14, %v2076_v63, %v2088_v5 }
 0x23b   : > { %2093 = vst.msk [vmem:[%s232_s9] sm:$0xff] %vm2092_vm15, %v2090_v20 }
 0x23c   : > { %2804 = shalt.err (!%p2801_p3)
}
 0x23d   : > { %s2805_s18 = scalar_lea.hbm %s3681_s12, 128  ;;  %s2809_s26 = scalar_lea.hbm %s3731_s5, 256 }
 0x23e   : > { %p2806_p4 = scmp.ne.s32.totalorder %s3681_s12, %s2805_s18  ;;  %p2810_p9 = scmp.lt.u32.totalorder %s3681_s12, %s3731_s5 }
 0x23f   : > { %p2811_p10 = scmp.lt.u32.totalorder %s2809_s26, %s2805_s18  ;;  %p2813_p12 = scmp.lt.u32.totalorder %s2805_s18, %s3681_s12 }
 0x240   : > { %p2807_p7 = pnand %p2806_p4, %p2928_p5 }
 0x241   : > { %p2812_p11 = por %p2811_p10, %p2810_p9 }
 0x242   : > { %p2808_p8 = pneg %p2807_p7 }
 0x243   : > { %p2814_p13 = por %p2813_p12, %p2812_p11 }
 0x245   : > { %p2815_p0 = pnand %p2814_p13, %p2808_p8 }
 0x247   : > { %2818 = shalt.err (!%p2815_p0)
}
 0x248   : > { %2493 = dma.vmem_to_hbm [thread:$0]  (%p2928_p5), %s3683_s10, 128, %s3681_s12, %s2095_s13  }
 0x249 PF: > { %p2499_p1 = scmp.ge.s32.totalorder %s2853_s23, 2  ;;  %s2120_s7 = sand.u32 1, %s2841_s20  }
 0x24a   : > { %s2121_s8 = scalar_lea.sflag [#allocation4], %s2120_s7 }
 0x24b   : > { %p2496_p2 = pnand %p2499_p1, %p2932_p6 }
 0x24d   : > { %2836 = dma.done.wait (!%p2496_p2), %s2121_s8, 128  }
 0x24e   : > { %2838 = vsyncadd (!%p2496_p2), %s2121_s8, 4294967168  ;;  %p17_p3 = scmp.ge.s32.totalorder %s2915_s25, 4   ;;  %s3734_s20 = smov %s2845_s21 }
 0x24f   : > { %s3735_s21 = smov %s2849_s22  ;;  %s3736_s22 = smov %s2926_s28 }
 0x250   : > { %s3737_s23 = smov %s2915_s25  ;;  %19 = sbr.rel (!%p17_p3) target bundleno = 6 (0x6), region = 75 }
 0x257   :  { %2126 = vsyncpa [#allocation4], 1 }
 0x258   :  { %2128 = vsyncpa [#allocation4 + $0x1], 1 }

</bundles_post_ra>
